<compile_context>
chip_gen: v7x
topology: tpu7x:2x2x1
jax: 0.10.0
libtpu: 0.0.40
codegen_flags: <defaults>
</compile_context>

<pallas_src>
import math

import jax
import jax.numpy as jnp
import numpy as np
from jax.experimental import pallas as pl
from jax.experimental.pallas import tpu as pltpu

KERNEL_SIZES = [(1, 1), (1, 3), (1, 5), (3, 1), (3, 3), (3, 5)]
NUM_KERNELS = len(KERNEL_SIZES)
PH, PW = 1, 2          # padding of the largest (3, 5) receptive field
KH = 3                 # row-tap envelope (row offsets di in {-1, 0, +1})

# Static tap metadata: per branch, (row offset, col offset, flat weight index)
# of its real taps only (no structurally-zero envelope taps).
TAPS = []
_widx = 0
for _kh, _kw in KERNEL_SIZES:
    _taps_k = []
    for _r in range(_kh):
        for _c in range(_kw):
            _taps_k.append((_r - _kh // 2, _c - _kw // 2, _widx))
            _widx += 1
    TAPS.append(_taps_k)
TOTAL_TAPS = _widx     # 1 + 3 + 5 + 3 + 9 + 15 = 36


def _make_kernel(H, LP, BG):
    def kernel(xp_ref, tw_ref, cb_ref, aw_ref, ab_ref, o_ref):
        # Hoist all SMEM scalar reads out of the per-group loop (no re-reads
        # / re-broadcast inside the unrolled tap code).
        tw = [tw_ref[i] for i in range(TOTAL_TAPS)]
        cb = [cb_ref[k] for k in range(NUM_KERNELS)]
        aw = [aw_ref[k] for k in range(NUM_KERNELS)]
        ab = ab_ref[0]

        @pl.loop(0, BG)
        def _(g):
            xp = xp_ref[g]                                    # [H+2, LP]
            # Three shared row-shifted slabs (di = -1, 0, +1).
            rows = [xp[i:i + H, :] for i in range(KH)]
            out = None
            for k in range(NUM_KERNELS):
                acc = None
                for di, dj, widx in TAPS[k]:
                    slab = rows[di + 1]
                    if dj != 0:
                        # output lane p must read input lane p + dj; per-plane
                        # zero pad (2 lanes each side) absorbs the shift.
                        slab = pltpu.roll(slab, shift=(-dj) % LP, axis=1)
                    term = tw[widx] * slab
                    acc = term if acc is None else acc + term
                branch = jnp.maximum(acc + cb[k], 0.0)        # bias + ReLU
                term = aw[k] * branch                         # fused 1x1 agg
                out = term if out is None else out + term
            o_ref[g] = (out + ab).astype(o_ref.dtype)

    return kernel


def inception_block(x, conv_ws, conv_bs, agg_w, agg_b):
    """x: [N, 1, H, W] float -> [N, 1, H, W] float (N = batch * d_model)."""
    N, C, H, W = x.shape
    assert C == 1
    Wp = W + 2 * PW
    Hp = H + 2 * PH

    # Lane-pack factor: packed width G*Wp is a multiple of 128 when reasonable,
    # otherwise at least 128 lanes.
    g_mult = 128 // math.gcd(Wp, 128)
    G = g_mult if g_mult * Wp <= 1024 else max(1, -(-128 // Wp))
    LP = G * Wp

    Npad = -(-N // G) * G            # pad plane count to a multiple of G
    NG = Npad // G                   # number of packed groups
    BG = min(NG, 2)                  # packed groups (= BG*G planes) per step
    NGpad = -(-NG // BG) * BG

    # pad + lane-pack + reshape in one wrapper transform (fused under jit).
    planes = jnp.pad(x[:, 0].astype(jnp.float32),
                     ((0, Npad - N), (PH, PH), (PW, PW)))      # [Npad, Hp, Wp]
    packed = (planes.reshape(NG, G, Hp, Wp)
              .transpose(0, 2, 1, 3)
              .reshape(NG, Hp, LP))
    packed = jnp.pad(packed, ((0, NGpad - NG), (0, 0), (0, 0)))

    # Branch weights flattened per branch (row-major kh*kw); trace-safe jnp.
    tw = jnp.concatenate([jnp.asarray(w, jnp.float32).reshape(-1)
                          for w in conv_ws])                   # [36]
    cb = jnp.concatenate([jnp.asarray(b, jnp.float32).reshape(-1)
                          for b in conv_bs])                   # [6]
    aw = jnp.asarray(agg_w, jnp.float32).reshape(-1)           # [6]
    ab = jnp.asarray(agg_b, jnp.float32).reshape(-1)           # [1]

    grid_spec = pltpu.PrefetchScalarGridSpec(
        num_scalar_prefetch=0,
        grid=(NGpad // BG,),
        in_specs=[
            pl.BlockSpec((BG, Hp, LP), lambda b: (b, 0, 0)),
            pl.BlockSpec(memory_space=pltpu.MemorySpace.SMEM),
            pl.BlockSpec(memory_space=pltpu.MemorySpace.SMEM),
            pl.BlockSpec(memory_space=pltpu.MemorySpace.SMEM),
            pl.BlockSpec(memory_space=pltpu.MemorySpace.SMEM),
        ],
        out_specs=pl.BlockSpec((BG, H, LP), lambda b: (b, 0, 0)),
    )
    out_packed = pl.pallas_call(
        _make_kernel(H, LP, BG),
        out_shape=jax.ShapeDtypeStruct((NGpad, H, LP), jnp.float32),
        grid_spec=grid_spec,
        compiler_params=pltpu.CompilerParams(
            dimension_semantics=("parallel",)),   # independent grid points
    )(packed, tw, cb, aw, ab)

    # Unpack: drop per-plane lane padding and the plane-count padding.
    out = (out_packed.reshape(NGpad, H, G, Wp)
           .transpose(0, 2, 1, 3)
           .reshape(NGpad * G, H, Wp)[:N, :, PW:PW + W])
    return out[:, None, :, :].astype(x.dtype)                  # [N, 1, H, W]


def reference(x, conv_ws, conv_bs, agg_w, agg_b):
    """Plain-JAX reference matching the PyTorch forward exactly."""
    outs = []
    for (kh, kw), w, b in zip(KERNEL_SIZES, conv_ws, conv_bs):
        y = jax.lax.conv_general_dilated(
            x, jnp.asarray(w, jnp.float32), (1, 1),
            [(kh // 2, kh // 2), (kw // 2, kw // 2)],
            dimension_numbers=("NCHW", "OIHW", "NCHW")) + jnp.asarray(b)
        outs.append(jnp.maximum(y, 0.0))
    comb = jnp.concatenate(outs, axis=1)                       # [N, 6, H, W]
    agg = jnp.einsum("nchw,c->nhw", comb, jnp.asarray(agg_w).reshape(-1))
    return agg[:, None, :, :] + jnp.asarray(agg_b).reshape(-1)[0]


if __name__ == "__main__":
    key = jax.random.PRNGKey(0)
    batch, d_model, H, W = 4, 32, 8, 16
    N = batch * d_model                                        # batch * d_model
    keys = jax.random.split(key, 2 * NUM_KERNELS + 3)

    x = jax.random.normal(keys[0], (N, 1, H, W), jnp.float32)
    conv_ws = [
        jax.random.normal(keys[1 + k], (1, 1, kh, kw), jnp.float32) * 0.3
        for k, (kh, kw) in enumerate(KERNEL_SIZES)
    ]
    conv_bs = [
        jax.random.normal(keys[1 + NUM_KERNELS + k], (1,), jnp.float32) * 0.1
        for k in range(NUM_KERNELS)
    ]
    agg_w = jax.random.normal(keys[-2], (NUM_KERNELS,), jnp.float32) * 0.3
    agg_b = jax.random.normal(keys[-1], (1,), jnp.float32) * 0.1

    fwd = jax.jit(inception_block)
    out = jax.block_until_ready(fwd(x, conv_ws, conv_bs, agg_w, agg_b))

    ref = reference(x, conv_ws, conv_bs, agg_w, agg_b)
    assert out.shape == (N, 1, H, W)
    np.testing.assert_allclose(np.asarray(out), np.asarray(ref),
                               rtol=1e-4, atol=1e-4)
    print("KERNEL_OK")
</pallas_src>

<mosaic_0001>
module attributes {stable_mosaic.version = 11 : i64} {
  func.func @kernel(%arg0: i32, %arg1: memref<2x10x640xf32, #tpu.memory_space<vmem>>, %arg2: memref<36xf32, #tpu.memory_space<smem>>, %arg3: memref<6xf32, #tpu.memory_space<smem>>, %arg4: memref<6xf32, #tpu.memory_space<smem>>, %arg5: memref<1xf32, #tpu.memory_space<smem>>, %arg6: memref<2x8x640xf32, #tpu.memory_space<vmem>>) attributes {dimension_semantics = [#tpu.dimension_semantics<parallel>], iteration_bounds = array<i64: 2>, scalar_prefetch = 0 : i64, scratch_operands = 0 : i64, tpu.core_type = #tpu.core_type<tc>, window_params = [{transform_indices = @transform_0, window_bounds = array<i64: 2, 10, 640>}, {transform_indices = @transform_1, window_bounds = array<i64: 36>}, {transform_indices = @transform_2, window_bounds = array<i64: 6>}, {transform_indices = @transform_3, window_bounds = array<i64: 6>}, {transform_indices = @transform_4, window_bounds = array<i64: 1>}, {transform_indices = @transform_5, window_bounds = array<i64: 2, 8, 640>}]} {
    %c0 = arith.constant 0 : index
    %0 = memref.load %arg2[%c0] : memref<36xf32, #tpu.memory_space<smem>>
    %c1 = arith.constant 1 : index
    %1 = memref.load %arg2[%c1] : memref<36xf32, #tpu.memory_space<smem>>
    %c2 = arith.constant 2 : index
    %2 = memref.load %arg2[%c2] : memref<36xf32, #tpu.memory_space<smem>>
    %c3 = arith.constant 3 : index
    %3 = memref.load %arg2[%c3] : memref<36xf32, #tpu.memory_space<smem>>
    %c4 = arith.constant 4 : index
    %4 = memref.load %arg2[%c4] : memref<36xf32, #tpu.memory_space<smem>>
    %c5 = arith.constant 5 : index
    %5 = memref.load %arg2[%c5] : memref<36xf32, #tpu.memory_space<smem>>
    %c6 = arith.constant 6 : index
    %6 = memref.load %arg2[%c6] : memref<36xf32, #tpu.memory_space<smem>>
    %c7 = arith.constant 7 : index
    %7 = memref.load %arg2[%c7] : memref<36xf32, #tpu.memory_space<smem>>
    %c8 = arith.constant 8 : index
    %8 = memref.load %arg2[%c8] : memref<36xf32, #tpu.memory_space<smem>>
    %c9 = arith.constant 9 : index
    %9 = memref.load %arg2[%c9] : memref<36xf32, #tpu.memory_space<smem>>
    %c10 = arith.constant 10 : index
    %10 = memref.load %arg2[%c10] : memref<36xf32, #tpu.memory_space<smem>>
    %c11 = arith.constant 11 : index
    %11 = memref.load %arg2[%c11] : memref<36xf32, #tpu.memory_space<smem>>
    %c12 = arith.constant 12 : index
    %12 = memref.load %arg2[%c12] : memref<36xf32, #tpu.memory_space<smem>>
    %c13 = arith.constant 13 : index
    %13 = memref.load %arg2[%c13] : memref<36xf32, #tpu.memory_space<smem>>
    %c14 = arith.constant 14 : index
    %14 = memref.load %arg2[%c14] : memref<36xf32, #tpu.memory_space<smem>>
    %c15 = arith.constant 15 : index
    %15 = memref.load %arg2[%c15] : memref<36xf32, #tpu.memory_space<smem>>
    %c16 = arith.constant 16 : index
    %16 = memref.load %arg2[%c16] : memref<36xf32, #tpu.memory_space<smem>>
    %c17 = arith.constant 17 : index
    %17 = memref.load %arg2[%c17] : memref<36xf32, #tpu.memory_space<smem>>
    %c18 = arith.constant 18 : index
    %18 = memref.load %arg2[%c18] : memref<36xf32, #tpu.memory_space<smem>>
    %c19 = arith.constant 19 : index
    %19 = memref.load %arg2[%c19] : memref<36xf32, #tpu.memory_space<smem>>
    %c20 = arith.constant 20 : index
    %20 = memref.load %arg2[%c20] : memref<36xf32, #tpu.memory_space<smem>>
    %c21 = arith.constant 21 : index
    %21 = memref.load %arg2[%c21] : memref<36xf32, #tpu.memory_space<smem>>
    %c22 = arith.constant 22 : index
    %22 = memref.load %arg2[%c22] : memref<36xf32, #tpu.memory_space<smem>>
    %c23 = arith.constant 23 : index
    %23 = memref.load %arg2[%c23] : memref<36xf32, #tpu.memory_space<smem>>
    %c24 = arith.constant 24 : index
    %24 = memref.load %arg2[%c24] : memref<36xf32, #tpu.memory_space<smem>>
    %c25 = arith.constant 25 : index
    %25 = memref.load %arg2[%c25] : memref<36xf32, #tpu.memory_space<smem>>
    %c26 = arith.constant 26 : index
    %26 = memref.load %arg2[%c26] : memref<36xf32, #tpu.memory_space<smem>>
    %c27 = arith.constant 27 : index
    %27 = memref.load %arg2[%c27] : memref<36xf32, #tpu.memory_space<smem>>
    %c28 = arith.constant 28 : index
    %28 = memref.load %arg2[%c28] : memref<36xf32, #tpu.memory_space<smem>>
    %c29 = arith.constant 29 : index
    %29 = memref.load %arg2[%c29] : memref<36xf32, #tpu.memory_space<smem>>
    %c30 = arith.constant 30 : index
    %30 = memref.load %arg2[%c30] : memref<36xf32, #tpu.memory_space<smem>>
    %c31 = arith.constant 31 : index
    %31 = memref.load %arg2[%c31] : memref<36xf32, #tpu.memory_space<smem>>
    %c32 = arith.constant 32 : index
    %32 = memref.load %arg2[%c32] : memref<36xf32, #tpu.memory_space<smem>>
    %c33 = arith.constant 33 : index
    %33 = memref.load %arg2[%c33] : memref<36xf32, #tpu.memory_space<smem>>
    %c34 = arith.constant 34 : index
    %34 = memref.load %arg2[%c34] : memref<36xf32, #tpu.memory_space<smem>>
    %c35 = arith.constant 35 : index
    %35 = memref.load %arg2[%c35] : memref<36xf32, #tpu.memory_space<smem>>
    %c0_0 = arith.constant 0 : index
    %36 = memref.load %arg3[%c0_0] : memref<6xf32, #tpu.memory_space<smem>>
    %c1_1 = arith.constant 1 : index
    %37 = memref.load %arg3[%c1_1] : memref<6xf32, #tpu.memory_space<smem>>
    %c2_2 = arith.constant 2 : index
    %38 = memref.load %arg3[%c2_2] : memref<6xf32, #tpu.memory_space<smem>>
    %c3_3 = arith.constant 3 : index
    %39 = memref.load %arg3[%c3_3] : memref<6xf32, #tpu.memory_space<smem>>
    %c4_4 = arith.constant 4 : index
    %40 = memref.load %arg3[%c4_4] : memref<6xf32, #tpu.memory_space<smem>>
    %c5_5 = arith.constant 5 : index
    %41 = memref.load %arg3[%c5_5] : memref<6xf32, #tpu.memory_space<smem>>
    %c0_6 = arith.constant 0 : index
    %42 = memref.load %arg4[%c0_6] : memref<6xf32, #tpu.memory_space<smem>>
    %c1_7 = arith.constant 1 : index
    %43 = memref.load %arg4[%c1_7] : memref<6xf32, #tpu.memory_space<smem>>
    %c2_8 = arith.constant 2 : index
    %44 = memref.load %arg4[%c2_8] : memref<6xf32, #tpu.memory_space<smem>>
    %c3_9 = arith.constant 3 : index
    %45 = memref.load %arg4[%c3_9] : memref<6xf32, #tpu.memory_space<smem>>
    %c4_10 = arith.constant 4 : index
    %46 = memref.load %arg4[%c4_10] : memref<6xf32, #tpu.memory_space<smem>>
    %c5_11 = arith.constant 5 : index
    %47 = memref.load %arg4[%c5_11] : memref<6xf32, #tpu.memory_space<smem>>
    %c0_12 = arith.constant 0 : index
    %48 = memref.load %arg5[%c0_12] : memref<1xf32, #tpu.memory_space<smem>>
    %c0_i32 = arith.constant 0 : i32
    %c2_i32 = arith.constant 2 : i32
    %49 = arith.addi %c0_i32, %c2_i32 : i32
    %c1_i32 = arith.constant 1 : i32
    scf.for %arg7 = %c0_i32 to %49 step %c1_i32  : i32 {
      %c1_i32_14 = arith.constant 1 : i32
      %50 = arith.muli %arg7, %c1_i32_14 : i32
      %c0_i32_15 = arith.constant 0 : i32
      %51 = arith.addi %c0_i32_15, %50 : i32
      %52 = arith.index_cast %51 : i32 to index
      %c0_16 = arith.constant 0 : index
      %c0_17 = arith.constant 0 : index
      %53 = vector.load %arg1[%52, %c0_16, %c0_17] : memref<2x10x640xf32, #tpu.memory_space<vmem>>, vector<1x10x640xf32>
      %54 = vector.shape_cast %53 : vector<1x10x640xf32> to vector<10x640xf32>
      %55 = vector.extract_strided_slice %54 {offsets = [0, 0], sizes = [8, 640], strides = [1, 1]} : vector<10x640xf32> to vector<8x640xf32>
      %56 = vector.extract_strided_slice %54 {offsets = [1, 0], sizes = [8, 640], strides = [1, 1]} : vector<10x640xf32> to vector<8x640xf32>
      %57 = vector.extract_strided_slice %54 {offsets = [2, 0], sizes = [8, 640], strides = [1, 1]} : vector<10x640xf32> to vector<8x640xf32>
      %58 = vector.broadcast %0 : f32 to vector<8x640xf32>
      %59 = arith.mulf %58, %56 : vector<8x640xf32>
      %60 = vector.broadcast %36 : f32 to vector<8x640xf32>
      %61 = arith.addf %59, %60 : vector<8x640xf32>
      %cst = arith.constant 0.000000e+00 : f32
      %62 = vector.broadcast %cst : f32 to vector<8x640xf32>
      %63 = arith.maximumf %61, %62 : vector<8x640xf32>
      %64 = vector.broadcast %42 : f32 to vector<8x640xf32>
      %65 = arith.mulf %64, %63 : vector<8x640xf32>
      %c1_i32_18 = arith.constant 1 : i32
      %66 = tpu.dynamic_rotate %56 by %c1_i32_18 dim 1 : vector<8x640xf32>, i32 -> vector<8x640xf32>
      %67 = vector.broadcast %1 : f32 to vector<8x640xf32>
      %68 = arith.mulf %67, %66 : vector<8x640xf32>
      %69 = vector.broadcast %2 : f32 to vector<8x640xf32>
      %70 = arith.mulf %69, %56 : vector<8x640xf32>
      %71 = arith.addf %68, %70 : vector<8x640xf32>
      %c639_i32 = arith.constant 639 : i32
      %72 = tpu.dynamic_rotate %56 by %c639_i32 dim 1 : vector<8x640xf32>, i32 -> vector<8x640xf32>
      %73 = vector.broadcast %3 : f32 to vector<8x640xf32>
      %74 = arith.mulf %73, %72 : vector<8x640xf32>
      %75 = arith.addf %71, %74 : vector<8x640xf32>
      %76 = vector.broadcast %37 : f32 to vector<8x640xf32>
      %77 = arith.addf %75, %76 : vector<8x640xf32>
      %cst_19 = arith.constant 0.000000e+00 : f32
      %78 = vector.broadcast %cst_19 : f32 to vector<8x640xf32>
      %79 = arith.maximumf %77, %78 : vector<8x640xf32>
      %80 = vector.broadcast %43 : f32 to vector<8x640xf32>
      %81 = arith.mulf %80, %79 : vector<8x640xf32>
      %82 = arith.addf %65, %81 : vector<8x640xf32>
      %c2_i32_20 = arith.constant 2 : i32
      %83 = tpu.dynamic_rotate %56 by %c2_i32_20 dim 1 : vector<8x640xf32>, i32 -> vector<8x640xf32>
      %84 = vector.broadcast %4 : f32 to vector<8x640xf32>
      %85 = arith.mulf %84, %83 : vector<8x640xf32>
      %c1_i32_21 = arith.constant 1 : i32
      %86 = tpu.dynamic_rotate %56 by %c1_i32_21 dim 1 : vector<8x640xf32>, i32 -> vector<8x640xf32>
      %87 = vector.broadcast %5 : f32 to vector<8x640xf32>
      %88 = arith.mulf %87, %86 : vector<8x640xf32>
      %89 = arith.addf %85, %88 : vector<8x640xf32>
      %90 = vector.broadcast %6 : f32 to vector<8x640xf32>
      %91 = arith.mulf %90, %56 : vector<8x640xf32>
      %92 = arith.addf %89, %91 : vector<8x640xf32>
      %c639_i32_22 = arith.constant 639 : i32
      %93 = tpu.dynamic_rotate %56 by %c639_i32_22 dim 1 : vector<8x640xf32>, i32 -> vector<8x640xf32>
      %94 = vector.broadcast %7 : f32 to vector<8x640xf32>
      %95 = arith.mulf %94, %93 : vector<8x640xf32>
      %96 = arith.addf %92, %95 : vector<8x640xf32>
      %c638_i32 = arith.constant 638 : i32
      %97 = tpu.dynamic_rotate %56 by %c638_i32 dim 1 : vector<8x640xf32>, i32 -> vector<8x640xf32>
      %98 = vector.broadcast %8 : f32 to vector<8x640xf32>
      %99 = arith.mulf %98, %97 : vector<8x640xf32>
      %100 = arith.addf %96, %99 : vector<8x640xf32>
      %101 = vector.broadcast %38 : f32 to vector<8x640xf32>
      %102 = arith.addf %100, %101 : vector<8x640xf32>
      %cst_23 = arith.constant 0.000000e+00 : f32
      %103 = vector.broadcast %cst_23 : f32 to vector<8x640xf32>
      %104 = arith.maximumf %102, %103 : vector<8x640xf32>
      %105 = vector.broadcast %44 : f32 to vector<8x640xf32>
      %106 = arith.mulf %105, %104 : vector<8x640xf32>
      %107 = arith.addf %82, %106 : vector<8x640xf32>
      %108 = vector.broadcast %9 : f32 to vector<8x640xf32>
      %109 = arith.mulf %108, %55 : vector<8x640xf32>
      %110 = vector.broadcast %10 : f32 to vector<8x640xf32>
      %111 = arith.mulf %110, %56 : vector<8x640xf32>
      %112 = arith.addf %109, %111 : vector<8x640xf32>
      %113 = vector.broadcast %11 : f32 to vector<8x640xf32>
      %114 = arith.mulf %113, %57 : vector<8x640xf32>
      %115 = arith.addf %112, %114 : vector<8x640xf32>
      %116 = vector.broadcast %39 : f32 to vector<8x640xf32>
      %117 = arith.addf %115, %116 : vector<8x640xf32>
      %cst_24 = arith.constant 0.000000e+00 : f32
      %118 = vector.broadcast %cst_24 : f32 to vector<8x640xf32>
      %119 = arith.maximumf %117, %118 : vector<8x640xf32>
      %120 = vector.broadcast %45 : f32 to vector<8x640xf32>
      %121 = arith.mulf %120, %119 : vector<8x640xf32>
      %122 = arith.addf %107, %121 : vector<8x640xf32>
      %c1_i32_25 = arith.constant 1 : i32
      %123 = tpu.dynamic_rotate %55 by %c1_i32_25 dim 1 : vector<8x640xf32>, i32 -> vector<8x640xf32>
      %124 = vector.broadcast %12 : f32 to vector<8x640xf32>
      %125 = arith.mulf %124, %123 : vector<8x640xf32>
      %126 = vector.broadcast %13 : f32 to vector<8x640xf32>
      %127 = arith.mulf %126, %55 : vector<8x640xf32>
      %128 = arith.addf %125, %127 : vector<8x640xf32>
      %c639_i32_26 = arith.constant 639 : i32
      %129 = tpu.dynamic_rotate %55 by %c639_i32_26 dim 1 : vector<8x640xf32>, i32 -> vector<8x640xf32>
      %130 = vector.broadcast %14 : f32 to vector<8x640xf32>
      %131 = arith.mulf %130, %129 : vector<8x640xf32>
      %132 = arith.addf %128, %131 : vector<8x640xf32>
      %c1_i32_27 = arith.constant 1 : i32
      %133 = tpu.dynamic_rotate %56 by %c1_i32_27 dim 1 : vector<8x640xf32>, i32 -> vector<8x640xf32>
      %134 = vector.broadcast %15 : f32 to vector<8x640xf32>
      %135 = arith.mulf %134, %133 : vector<8x640xf32>
      %136 = arith.addf %132, %135 : vector<8x640xf32>
      %137 = vector.broadcast %16 : f32 to vector<8x640xf32>
      %138 = arith.mulf %137, %56 : vector<8x640xf32>
      %139 = arith.addf %136, %138 : vector<8x640xf32>
      %c639_i32_28 = arith.constant 639 : i32
      %140 = tpu.dynamic_rotate %56 by %c639_i32_28 dim 1 : vector<8x640xf32>, i32 -> vector<8x640xf32>
      %141 = vector.broadcast %17 : f32 to vector<8x640xf32>
      %142 = arith.mulf %141, %140 : vector<8x640xf32>
      %143 = arith.addf %139, %142 : vector<8x640xf32>
      %c1_i32_29 = arith.constant 1 : i32
      %144 = tpu.dynamic_rotate %57 by %c1_i32_29 dim 1 : vector<8x640xf32>, i32 -> vector<8x640xf32>
      %145 = vector.broadcast %18 : f32 to vector<8x640xf32>
      %146 = arith.mulf %145, %144 : vector<8x640xf32>
      %147 = arith.addf %143, %146 : vector<8x640xf32>
      %148 = vector.broadcast %19 : f32 to vector<8x640xf32>
      %149 = arith.mulf %148, %57 : vector<8x640xf32>
      %150 = arith.addf %147, %149 : vector<8x640xf32>
      %c639_i32_30 = arith.constant 639 : i32
      %151 = tpu.dynamic_rotate %57 by %c639_i32_30 dim 1 : vector<8x640xf32>, i32 -> vector<8x640xf32>
      %152 = vector.broadcast %20 : f32 to vector<8x640xf32>
      %153 = arith.mulf %152, %151 : vector<8x640xf32>
      %154 = arith.addf %150, %153 : vector<8x640xf32>
      %155 = vector.broadcast %40 : f32 to vector<8x640xf32>
      %156 = arith.addf %154, %155 : vector<8x640xf32>
      %cst_31 = arith.constant 0.000000e+00 : f32
      %157 = vector.broadcast %cst_31 : f32 to vector<8x640xf32>
      %158 = arith.maximumf %156, %157 : vector<8x640xf32>
      %159 = vector.broadcast %46 : f32 to vector<8x640xf32>
      %160 = arith.mulf %159, %158 : vector<8x640xf32>
      %161 = arith.addf %122, %160 : vector<8x640xf32>
      %c2_i32_32 = arith.constant 2 : i32
      %162 = tpu.dynamic_rotate %55 by %c2_i32_32 dim 1 : vector<8x640xf32>, i32 -> vector<8x640xf32>
      %163 = vector.broadcast %21 : f32 to vector<8x640xf32>
      %164 = arith.mulf %163, %162 : vector<8x640xf32>
      %c1_i32_33 = arith.constant 1 : i32
      %165 = tpu.dynamic_rotate %55 by %c1_i32_33 dim 1 : vector<8x640xf32>, i32 -> vector<8x640xf32>
      %166 = vector.broadcast %22 : f32 to vector<8x640xf32>
      %167 = arith.mulf %166, %165 : vector<8x640xf32>
      %168 = arith.addf %164, %167 : vector<8x640xf32>
      %169 = vector.broadcast %23 : f32 to vector<8x640xf32>
      %170 = arith.mulf %169, %55 : vector<8x640xf32>
      %171 = arith.addf %168, %170 : vector<8x640xf32>
      %c639_i32_34 = arith.constant 639 : i32
      %172 = tpu.dynamic_rotate %55 by %c639_i32_34 dim 1 : vector<8x640xf32>, i32 -> vector<8x640xf32>
      %173 = vector.broadcast %24 : f32 to vector<8x640xf32>
      %174 = arith.mulf %173, %172 : vector<8x640xf32>
      %175 = arith.addf %171, %174 : vector<8x640xf32>
      %c638_i32_35 = arith.constant 638 : i32
      %176 = tpu.dynamic_rotate %55 by %c638_i32_35 dim 1 : vector<8x640xf32>, i32 -> vector<8x640xf32>
      %177 = vector.broadcast %25 : f32 to vector<8x640xf32>
      %178 = arith.mulf %177, %176 : vector<8x640xf32>
      %179 = arith.addf %175, %178 : vector<8x640xf32>
      %c2_i32_36 = arith.constant 2 : i32
      %180 = tpu.dynamic_rotate %56 by %c2_i32_36 dim 1 : vector<8x640xf32>, i32 -> vector<8x640xf32>
      %181 = vector.broadcast %26 : f32 to vector<8x640xf32>
      %182 = arith.mulf %181, %180 : vector<8x640xf32>
      %183 = arith.addf %179, %182 : vector<8x640xf32>
      %c1_i32_37 = arith.constant 1 : i32
      %184 = tpu.dynamic_rotate %56 by %c1_i32_37 dim 1 : vector<8x640xf32>, i32 -> vector<8x640xf32>
      %185 = vector.broadcast %27 : f32 to vector<8x640xf32>
      %186 = arith.mulf %185, %184 : vector<8x640xf32>
      %187 = arith.addf %183, %186 : vector<8x640xf32>
      %188 = vector.broadcast %28 : f32 to vector<8x640xf32>
      %189 = arith.mulf %188, %56 : vector<8x640xf32>
      %190 = arith.addf %187, %189 : vector<8x640xf32>
      %c639_i32_38 = arith.constant 639 : i32
      %191 = tpu.dynamic_rotate %56 by %c639_i32_38 dim 1 : vector<8x640xf32>, i32 -> vector<8x640xf32>
      %192 = vector.broadcast %29 : f32 to vector<8x640xf32>
      %193 = arith.mulf %192, %191 : vector<8x640xf32>
      %194 = arith.addf %190, %193 : vector<8x640xf32>
      %c638_i32_39 = arith.constant 638 : i32
      %195 = tpu.dynamic_rotate %56 by %c638_i32_39 dim 1 : vector<8x640xf32>, i32 -> vector<8x640xf32>
      %196 = vector.broadcast %30 : f32 to vector<8x640xf32>
      %197 = arith.mulf %196, %195 : vector<8x640xf32>
      %198 = arith.addf %194, %197 : vector<8x640xf32>
      %c2_i32_40 = arith.constant 2 : i32
      %199 = tpu.dynamic_rotate %57 by %c2_i32_40 dim 1 : vector<8x640xf32>, i32 -> vector<8x640xf32>
      %200 = vector.broadcast %31 : f32 to vector<8x640xf32>
      %201 = arith.mulf %200, %199 : vector<8x640xf32>
      %202 = arith.addf %198, %201 : vector<8x640xf32>
      %c1_i32_41 = arith.constant 1 : i32
      %203 = tpu.dynamic_rotate %57 by %c1_i32_41 dim 1 : vector<8x640xf32>, i32 -> vector<8x640xf32>
      %204 = vector.broadcast %32 : f32 to vector<8x640xf32>
      %205 = arith.mulf %204, %203 : vector<8x640xf32>
      %206 = arith.addf %202, %205 : vector<8x640xf32>
      %207 = vector.broadcast %33 : f32 to vector<8x640xf32>
      %208 = arith.mulf %207, %57 : vector<8x640xf32>
      %209 = arith.addf %206, %208 : vector<8x640xf32>
      %c639_i32_42 = arith.constant 639 : i32
      %210 = tpu.dynamic_rotate %57 by %c639_i32_42 dim 1 : vector<8x640xf32>, i32 -> vector<8x640xf32>
      %211 = vector.broadcast %34 : f32 to vector<8x640xf32>
      %212 = arith.mulf %211, %210 : vector<8x640xf32>
      %213 = arith.addf %209, %212 : vector<8x640xf32>
      %c638_i32_43 = arith.constant 638 : i32
      %214 = tpu.dynamic_rotate %57 by %c638_i32_43 dim 1 : vector<8x640xf32>, i32 -> vector<8x640xf32>
      %215 = vector.broadcast %35 : f32 to vector<8x640xf32>
      %216 = arith.mulf %215, %214 : vector<8x640xf32>
      %217 = arith.addf %213, %216 : vector<8x640xf32>
      %218 = vector.broadcast %41 : f32 to vector<8x640xf32>
      %219 = arith.addf %217, %218 : vector<8x640xf32>
      %cst_44 = arith.constant 0.000000e+00 : f32
      %220 = vector.broadcast %cst_44 : f32 to vector<8x640xf32>
      %221 = arith.maximumf %219, %220 : vector<8x640xf32>
      %222 = vector.broadcast %47 : f32 to vector<8x640xf32>
      %223 = arith.mulf %222, %221 : vector<8x640xf32>
      %224 = arith.addf %161, %223 : vector<8x640xf32>
      %225 = vector.broadcast %48 : f32 to vector<8x640xf32>
      %226 = arith.addf %224, %225 : vector<8x640xf32>
      %227 = arith.index_cast %51 : i32 to index
      %c0_45 = arith.constant 0 : index
      %c0_46 = arith.constant 0 : index
      %228 = vector.load %arg6[%227, %c0_45, %c0_46] : memref<2x8x640xf32, #tpu.memory_space<vmem>>, vector<1x8x640xf32>
      %229 = vector.shape_cast %228 : vector<1x8x640xf32> to vector<8x640xf32>
      %230 = vector.shape_cast %226 : vector<8x640xf32> to vector<1x8x640xf32>
      tpu.vector_store %arg6[%227, %c0_45, %c0_46], %230 {strides = array<i32>} : memref<2x8x640xf32, #tpu.memory_space<vmem>>, vector<1x8x640xf32>,
    }
    %c2_i32_13 = arith.constant 2 : i32
    return
  }
  func.func @transform_0(%arg0: i32) -> (i32, i32, i32) {
    %c0_i32 = arith.constant 0 : i32
    %c0_i32_0 = arith.constant 0 : i32
    %c0_i32_1 = arith.constant 0 : i32
    return %arg0, %c0_i32, %c0_i32_0 : i32, i32, i32
  }
  func.func @transform_1(%arg0: i32) -> i32 {
    %c0_i32 = arith.constant 0 : i32
    %c0_i32_0 = arith.constant 0 : i32
    return %c0_i32 : i32
  }
  func.func @transform_2(%arg0: i32) -> i32 {
    %c0_i32 = arith.constant 0 : i32
    %c0_i32_0 = arith.constant 0 : i32
    return %c0_i32 : i32
  }
  func.func @transform_3(%arg0: i32) -> i32 {
    %c0_i32 = arith.constant 0 : i32
    %c0_i32_0 = arith.constant 0 : i32
    return %c0_i32 : i32
  }
  func.func @transform_4(%arg0: i32) -> i32 {
    %c0_i32 = arith.constant 0 : i32
    %c0_i32_0 = arith.constant 0 : i32
    return %c0_i32 : i32
  }
  func.func @transform_5(%arg0: i32) -> (i32, i32, i32) {
    %c0_i32 = arith.constant 0 : i32
    %c0_i32_0 = arith.constant 0 : i32
    %c0_i32_1 = arith.constant 0 : i32
    return %arg0, %c0_i32, %c0_i32_0 : i32, i32, i32
  }
}

</mosaic_0001>

<bundles_post_ra>
// kernel: inception_block.1
= control target key start
LH: loop header
LB: loop body
LE: loop exit
PB: predicated region body
PF: predicated region fallthrough
CT: control target
= control target key end

     0   :  { %s3473_s0 = inlined_call_operand.vmem [shape: f32[4,10,640], index: 0, kind: input, shape index: {}]   ;;  %s3474_s1 = inlined_call_operand.vmem [shape: f32[36], index: 1, kind: input, shape index: {}]   ;;  %s3475_s2 = inlined_call_operand.vmem [shape: f32[6], index: 2, kind: input, shape index: {}]   ;;  %s3476_s3 = inlined_call_operand.vmem [shape: f32[6], index: 3, kind: input, shape index: {}]   ;;  %s3477_s4 = inlined_call_operand.<no memory space> [shape: f32[1], index: 4, kind: input, shape index: {}]   ;;  %s3478_s5 = inlined_call_operand.vmem [shape: f32[4,8,640], index: 5, kind: output, shape index: {}]  }
   0x1   :  { %3527 = sst [smem:[#allocation113_spill]] %s3473_s0 }
   0x2   :  { %3528 = sst [smem:[#allocation114_spill]] %s3474_s1 }
   0x3   :  { %3529 = sst [smem:[#allocation115_spill]] %s3475_s2 }
   0x4   :  { %3530 = sst [smem:[#allocation116_spill]] %s3476_s3 }
   0x5   :  { %3531 = sst [smem:[#allocation117_spill]] %s3478_s5 }
   0x6   :  { %10 = sst [smem:[#allocation2]] %s3477_s4 }
   0x7   :  { %11 = vsyncpa [#allocation4], 0 }
   0x8   :  { %12 = vsyncpa [#allocation6], 0  ;;  %s1849_s20 = smov 0  }
   0x9 LB: > { %3532 = sst [smem:[#allocation10_spill]] %s1803_s20  ;;  %s1619_s21 = sadd.s32 4294967295, %s1803_s20   ;;  %s1803_s20 = sphi %s1849_s20, %s18_s20  }
   0xa   : > { %p1621_p0 = scmp.ge.s32.totalorder %s1803_s20, 1  ;;  %p159_p1 = scmp.lt.s32.totalorder %s1803_s20, 3 }
   0xb   : > { %s3533_s2 = sld [smem:[#allocation115_spill]]  ;;  %p1866_p3 = scmp.eq.s32.totalorder %s1619_s21, 0 }
   0xc   : > { %p1860_p2 = pnand %p1621_p0, %p159_p1  ;;  %s3536_s1 = sld [smem:[#allocation114_spill]] }
   0xd   : > { %s3535_s25 = scalar_select %p1866_p3, 1, 0 }
   0xe   : > { %s3534_s24 = scalar_select %p1860_p2, 1, 0 }
   0xf   : > { %p1699_p4 = pneg %p1860_p2  ;;  %s3537_s3 = sld [smem:[#allocation116_spill]] }
  0x11   : > { %s183_s4 = sshll.u32 %s3533_s2, 4  ;;  %p1880_p5 = pnand %p1866_p3, %p1699_p4  ;;  %s184_s4 = int_to_ptr.vmem [resolvable:$true] %s183_s4 }
  0x12   : > { %s172_s28 = sshll.u32 %s3536_s1, 4  ;;  %s1740_s8 = scalar_lea.vmem %s184_s4, 16  ;;  %s173_s28 = int_to_ptr.vmem [resolvable:$true] %s172_s28 }
  0x13   : > { %p1741_p6 = scmp.ne.s32.totalorder %s184_s4, %s1740_s8  ;;  %p1742_p7 = pneg %p1880_p5 }
  0x14   : > { %p1748_p10 = scmp.lt.s32.totalorder %s184_s4, %s184_s4  ;;  %p1749_p11 = scmp.lt.s32.totalorder %s1740_s8, %s1740_s8 }
  0x15   : > { %s194_s6 = sshll.u32 %s3537_s3, 4  ;;  %p1743_p8 = pnand %p1742_p7, %p1741_p6  ;;  %s1884_s6 = int_to_ptr.vmem [resolvable:$true] %s194_s6 }
  0x16   : > { %p1750_p12 = por %p1749_p11, %p1748_p10 }
  0x17   : > { %p1744_p9 = pneg %p1743_p8 }
  0x19   : > { %p1751_p13 = pnand %p1750_p12, %p1744_p9 }
  0x1b   : > { %1754 = shalt.err (!%p1751_p13)
}
  0x1c   : > { %s1809_s9 = smov [#allocation5]   ;;  %s1755_s10 = scalar_lea.vmem %s173_s28, 16 }
  0x1d   : > { %1705 = dma.vmem_to_smem (!%p1880_p5), %s184_s4, 16, %s1809_s9, [#allocation6]  }
  0x1e   : > { %p1756_p0 = scmp.ne.s32.totalorder %s173_s28, %s1755_s10  ;;  %p1763_p3 = scmp.lt.s32.totalorder %s173_s28, %s173_s28 }
  0x1f   : > { %p1764_p2 = scmp.lt.s32.totalorder %s1755_s10, %s1755_s10 }
  0x20   : > { %p1758_p1 = pnand %p1756_p0, %p1742_p7 }
  0x21   : > { %p1765_p6 = por %p1764_p2, %p1763_p3 }
  0x22   : > { %p1759_p4 = pneg %p1758_p1 }
  0x24   : > { %p1766_p8 = pnand %p1765_p6, %p1759_p4 }
  0x26   : > { %1769 = shalt.err (!%p1766_p8)
}
  0x27   : > { %s1810_s11 = smov [#allocation3]   ;;  %s1770_s12 = scalar_lea.vmem %s1884_s6, 16 }
  0x28   : > { %1702 = dma.vmem_to_smem (!%p1880_p5), %s173_s28, 16, %s1810_s11, [#allocation4]  }
  0x29   : > { %p1771_p9 = scmp.ne.s32.totalorder %s1884_s6, %s1770_s12  ;;  %p1778_p12 = scmp.lt.s32.totalorder %s1884_s6, %s1884_s6 }
  0x2a   : > { %p1779_p13 = scmp.lt.s32.totalorder %s1770_s12, %s1770_s12 }
  0x2b   : > { %p1773_p10 = pnand %p1771_p9, %p1742_p7 }
  0x2c   : > { %p1780_p2 = por %p1779_p13, %p1778_p12 }
  0x2d   : > { %p1774_p11 = pneg %p1773_p10 }
  0x2f   : > { %p1781_p3 = pnand %p1780_p2, %p1774_p11 }
  0x31   : > { %1784 = shalt.err (!%p1781_p3)
}
  0x32   : > { %s1811_s13 = smov [#allocation7]   ;;  %p3539_p0 = scmp.ne.s32.totalorder %s3534_s24, 0 }
  0x33   : > { %1708 = dma.vmem_to_smem (!%p1880_p5), %s1884_s6, 16, %s1811_s13, [#allocation6]  }
  0x34   : > { %220 = sbr.rel (%p3539_p0) target bundleno = 387 (0x183), region = 40  ;;  %p3540_p1 = scmp.ne.s32.totalorder (!%p3539_p0), %s3535_s25, 0 }
  0x3b   : > { %1794 = dma.done.wait (%p3540_p1), [#allocation4], 16  }
  0x3c   : > { %1796 = vsyncadd (%p3540_p1), [#allocation4], 4294967280 }
  0x3d   : > { %1798 = dma.done.wait (%p3540_p1), [#allocation6], 32  }
  0x3e   : > { %1800 = vsyncadd (%p3540_p1), [#allocation6], 4294967264 }
  0x3f   : > { %234 = sfence }
  0x40   : > { %s1630_s14 = sshll.u32 %s1619_s21, 1  ;;  %s1920_s15 = sld [smem:[#allocation3]] }
  0x41   : > { %p260_p5 = scmp.lt.s32.totalorder %s1630_s14, 3  ;;  %s1922_s16 = sld [smem:[#allocation3 + $0x1]] }
  0x42   : > { %s1924_s17 = sld [smem:[#allocation3 + $0x2]]  ;;  %s1926_s18 = sld [smem:[#allocation3 + $0x3]] }
  0x43   : > { %s3784_s14 = smov (!%p260_p5, %s1630_s14), 3  ;;  %s1928_s19 = sld [smem:[#allocation3 + $0x4]] }
  0x44   : > { %s1930_s22 = sld [smem:[#allocation3 + $0x5]]  ;;  %s1685_s23 = smul.u32 80, %s3784_s14 }
  0x45   : > { %s1932_s4 = sld [smem:[#allocation3 + $0x6]]  ;;  %s1686_s24 = smul.u32 40, %s3784_s14 }
  0x46   : > { %s1934_s25 = sld [smem:[#allocation3 + $0x7]]  ;;  %s3543_s0 = sld [smem:[#allocation113_spill]] }
  0x47   : > { %s1941_s28 = sld [smem:[#allocation3 + $0x8]]  ;;  %s3546_s5 = sld [smem:[#allocation117_spill]] }
  0x48   : > { %s1948_s7 = sld [smem:[#allocation3 + $0x9]]  ;;  %s1950_s8 = sld [smem:[#allocation3 + $0xa]] }
  0x49   : > { %3541 = sst [smem:[#allocation11_spill]] %s1928_s19  ;;  %s1952_s9 = sld [smem:[#allocation3 + $0xb]] }
  0x4a   : > { %s1954_s10 = sld [smem:[#allocation3 + $0xc]]  ;;  %s1956_s11 = sld [smem:[#allocation3 + $0xd]] }
  0x4b   : > { %3542 = sst [smem:[#allocation12_spill]] %s1932_s4  ;;  %s1958_s12 = sld [smem:[#allocation3 + $0xe]] }
  0x4c   : > { %s1939_s27 = scalar_lea.vmem %s3543_s0, %s1685_s23  ;;  %s1960_s13 = sld [smem:[#allocation3 + $0xf]] }
  0x4d   : > { %3544 = sst [smem:[#allocation13_spill]] %s1939_s27  ;;  %s1946_s6 = scalar_lea.vmem %s3546_s5, %s1686_s24 }
  0x4e   : > { %3545 = sst [smem:[#allocation14_spill]] %s1941_s28  ;;  %s1962_s14 = sld [smem:[#allocation3 + $0x10]] }
  0x4f   : > { %3547 = sst [smem:[#allocation15_spill]] %s1946_s6  ;;  %s1964_s23 = sld [smem:[#allocation3 + $0x11]] }
  0x50   : > { %3548 = sst [smem:[#allocation16_spill]] %s1948_s7  ;;  %s1966_s24 = sld [smem:[#allocation3 + $0x12]] }
  0x51   : > { %3549 = sst [smem:[#allocation17_spill]] %s1950_s8  ;;  %s1968_s21 = sld [smem:[#allocation3 + $0x13]] }
  0x52   : > { %3550 = sst [smem:[#allocation18_spill]] %s1952_s9  ;;  %s1970_s26 = sld [smem:[#allocation3 + $0x14]] }
  0x53   : > { %s1972_s29 = sld [smem:[#allocation3 + $0x15]]  ;;  %s1974_s30 = sld [smem:[#allocation3 + $0x16]] }
  0x54   : > { %3551 = sst [smem:[#allocation19_spill]] %s1962_s14  ;;  %s1976_s0 = sld [smem:[#allocation3 + $0x17]] }
  0x55   : > { %s1978_s1 = sld [smem:[#allocation3 + $0x18]]  ;;  %s1980_s2 = sld [smem:[#allocation3 + $0x19]] }
  0x56   : > { %3552 = sst [smem:[#allocation20_spill]] %s1966_s24  ;;  %s1984_s5 = sld [smem:[#allocation3 + $0x1b]] }
  0x57   : > { %3553 = sst [smem:[#allocation21_spill]] %s1968_s21  ;;  %s1982_s3 = sld [smem:[#allocation3 + $0x1a]] }
  0x58   : > { %3554 = sst [smem:[#allocation22_spill]] %s1970_s26  ;;  %s1988_s6 = sld [smem:[#allocation3 + $0x1d]] }
  0x59   : > { %s1986_s20 = sld [smem:[#allocation3 + $0x1c]]  ;;  %s1990_s24 = sld [smem:[#allocation3 + $0x1e]] }
  0x5a   : > { %3555 = sst [smem:[#allocation23_spill]] %s1976_s0  ;;  %s1992_s26 = sld [smem:[#allocation3 + $0x1f]] }
  0x5b   : > { %3556 = sst [smem:[#allocation24_spill]] %s1978_s1  ;;  %s1994_s21 = sld [smem:[#allocation3 + $0x20]] }
  0x5c   : > { %3557 = sst [smem:[#allocation25_spill]] %s1980_s2  ;;  %s1996_s7 = sld [smem:[#allocation3 + $0x21]] }
  0x5d   : > { %3558 = sst [smem:[#allocation26_spill]] %s1982_s3  ;;  %s1998_s28 = sld [smem:[#allocation3 + $0x22]] }
  0x5e   : > { %3559 = sst [smem:[#allocation27_spill]] %s1984_s5  ;;  %s2000_s9 = sld [smem:[#allocation3 + $0x23]] }
  0x5f   : > { %3560 = sst [smem:[#allocation28_spill]] %s1986_s20  ;;  %s2002_s8 = sld [smem:[#allocation5]] }
  0x60   : > { %3561 = sst [smem:[#allocation29_spill]] %s1990_s24  ;;  %s2004_s3 = sld [smem:[#allocation5 + $0x1]] }
  0x61   : > { %3562 = sst [smem:[#allocation30_spill]] %s1992_s26  ;;  %s2006_s19 = sld [smem:[#allocation5 + $0x2]] }
  0x62   : > { %3563 = sst [smem:[#allocation31_spill]] %s1994_s21  ;;  %s2008_s14 = sld [smem:[#allocation5 + $0x3]] }
  0x63   : > { %3564 = sst [smem:[#allocation32_spill]] %s1996_s7  ;;  %s2010_s2 = sld [smem:[#allocation5 + $0x4]] }
  0x64   : > { %3565 = sst [smem:[#allocation33_spill]] %s1998_s28  ;;  %s2012_s24 = sld [smem:[#allocation5 + $0x5]] }
  0x65   : > { %3566 = sst [smem:[#allocation34_spill]] %s2000_s9  ;;  %s2016_s21 = sld [smem:[#allocation7 + $0x1]] }
  0x66   : > { %3567 = sst [smem:[#allocation35_spill]] %s2004_s3  ;;  %s2014_s26 = sld [smem:[#allocation7]] }
  0x67   : > { %3568 = sst [smem:[#allocation36_spill]] %s2006_s19  ;;  %s2020_s28 = sld [smem:[#allocation7 + $0x3]] }
  0x68   : > { %s2018_s7 = sld [smem:[#allocation7 + $0x2]]  ;;  %s2022_s9 = sld [smem:[#allocation7 + $0x4]] }
  0x69   : > { %3569 = sst [smem:[#allocation37_spill]] %s2010_s2  ;;  %s2024_s20 = sld [smem:[#allocation7 + $0x5]] }
  0x6a   : > { %3570 = sst [smem:[#allocation38_spill]] %s2012_s24  ;;  %s2026_s1 = sld [smem:[#allocation2]] }
  0x6b   : > { %s2028_s19 = smov 0  }
  0x6c LB: >> { %s3571_s27 = sld [smem:[#allocation13_spill]]  ;;  %3572 = sst [smem:[#allocation39_spill]] %s1807_s19  ;;  %vm394_vm0 = vcmask 1046528   ;;  %v425_v25 = vlaneseq  ;;  %v439_v26 = vstv %s1924_s17  ;;  %vm786_vm1 = vcmask 1045504   ;;  %s1807_s19 = sphi %s2028_s19, %s327_s19  }
  0x6d   : >> { %s1683_s24 = smul.u32 80, %s1807_s19  ;;  %s3489_s19 = smov 2   ;;  %v2148_v27 = vstv %s1922_s16  ;;  %v2155_v29 = vstv %s1930_s22  ;;  %v2158_v30 = vstv %s1960_s13  ;;  %v2183_v47 = vstv %s1920_s15 }
  0x6e   : >> { %s3573_s5 = sld [smem:[#allocation27_spill]]  ;;  %v2152_v28 = vand.u32 127, %v425_v25  ;;  %v2201_v62 = vstv %s2002_s8  ;;  %s3575_s4 = sld [smem:[#allocation12_spill]] }
  0x6f   : >> { %s3574_s3 = sld [smem:[#allocation35_spill]]  ;;  %s3579_s0 = sld [smem:[#allocation23_spill]] }
  0x70   : >> { %vm427_vm2 = vcmp.lt.s32.totalorder %v2152_v28, 1  ;;  %vm495_vm3 = vcmp.lt.s32.totalorder %v2152_v28, 127  ;;  %vm564_vm4 = vcmp.lt.s32.totalorder %v2152_v28, 2  ;;  %vm654_vm5 = vcmp.lt.s32.totalorder %v2152_v28, 126 }
  0x72   : >> { %s2035_s2 = scalar_lea.vmem %s3571_s27, %s1683_s24  ;;  %s3485_s24 = smov 1  }
  0x73   : >> { %v2038_v0 = vld [vmem:[%s2035_s2 + $0x10] sm:$0xff]  ;;  %v2041_v1 = vld [vmem:[%s2035_s2 + $0x18] sm:$0xff]  ;;  %v2048_v4 = vld [vmem:[%s2035_s2] sm:$0xff]  ;;  %s3487_s27 = smov 127  }
  0x74   : >> { %v2044_v2 = vld [vmem:[%s2035_s2 + $0x38] sm:$0x3]  ;;  %v401_v3 = vrot.slane %v2038_v0, 1  ;;  %v2051_v5 = vld [vmem:[%s2035_s2 + $0x8] sm:$0xff]  ;;  %v404_v6 = vrot.slane %v2041_v1, 1  ;;  %v395_v9 = vrot.slane %v2048_v4, 1  ;;  %v2161_v31 = vstv %s3573_s5 }
  0x75   : >> { %v402_v7 = vrot.slane %v2044_v2, 1  ;;  %v2056_v8 = vld [vmem:[%s2035_s2 + $0x28] sm:$0x3]  ;;  %v2060_v10 = vld [vmem:[%s2035_s2 + $0x40] sm:$0x3]  ;;  %v398_v14 = vrot.slane %v2051_v5, 1  ;;  %v443_v32 = vmul.f32 %v439_v26, %v2041_v1  ;;  %v441_v34 = vmul.f32 %v439_v26, %v2051_v5 }
  0x76   : >> { %v396_v11 = vrot.slane %v2056_v8, 1  ;;  %v405_v12 = vrot.slane %v2060_v10, 1  ;;  %v2065_v13 = vld [vmem:[%s2035_s2 + $0x30] sm:$0x3]  ;;  %v2069_v15 = vld [vmem:[%s2035_s2 + $0x20] sm:$0xff]  ;;  %v448_v33 = vmul.f32 %v439_v26, %v2060_v10  ;;  %v442_v35 = vmul.f32 %v439_v26, %v2038_v0  ;;  %s3652_s5 = sld [smem:[#allocation33_spill]] }
  0x77   : >> { %v2072_v16 = vsel %vm394_vm0, %v401_v3, %v402_v7  ;;  %v399_v17 = vrot.slane %v2065_v13, 1  ;;  %v2076_v18 = vld [vmem:[%s2035_s2 + $0x48] sm:$0x3]  ;;  %v407_v22 = vrot.slane %v2069_v15, 1  ;;  %v983_v36 = vrot.slane %v2051_v5, 2 }
  0x78   : >> { %419 = vrot.lane.b32.xlu1 %v2072_v16, %s3485_s24  ;;  %v2081_v19 = vsel %vm394_vm0, %v395_v9, %v396_v11  ;;  %v2086_v20 = vsel %vm394_vm0, %v404_v6, %v405_v12  ;;  %v408_v23 = vrot.slane %v2076_v18, 1  ;;  %v984_v37 = vrot.slane %v2065_v13, 2 }
  0x79   : >> { %415 = vrot.lane.b32.xlu0 %v2081_v19, %s3485_s24  ;;  %v2089_v21 = vsel %vm394_vm0, %v398_v14, %v399_v17  ;;  %v446_v38 = vmul.f32 %v439_v26, %v2065_v13  ;;  %v447_v39 = vmul.f32 %v439_v26, %v2044_v2  ;;  %v980_v40 = vrot.slane %v2048_v4, 2 }
  0x7a   : >> { %v2098_v24 = vsel %vm394_vm0, %v407_v22, %v408_v23  ;;  %v981_v41 = vrot.slane %v2056_v8, 2  ;;  %v989_v42 = vrot.slane %v2041_v1, 2  ;;  %v990_v43 = vrot.slane %v2060_v10, 2 }
  0x7b   : >> { %v986_v44 = vrot.slane %v2038_v0, 2  ;;  %v987_v45 = vrot.slane %v2044_v2, 2  ;;  %v992_v46 = vrot.slane %v2069_v15, 2  ;;  %v993_v48 = vrot.slane %v2076_v18, 2 }
  0x7c   : >> { %421 = vrot.lane.b32.xlu1 %v2086_v20, %s3485_s24  ;;  %v469_v49 = vrot.slane %v443_v32, 1  ;;  %v470_v50 = vrot.slane %v448_v33, 1  ;;  %v463_v51 = vrot.slane %v441_v34, 1  ;;  %v464_v52 = vrot.slane %v446_v38, 1 }
  0x7d   : >> { %417 = vrot.lane.b32.xlu0 %v2089_v21, %s3485_s24  ;;  %v466_v53 = vrot.slane %v442_v35, 1  ;;  %v440_v54 = vmul.f32 %v439_v26, %v2048_v4  ;;  %v445_v55 = vmul.f32 %v439_v26, %v2056_v8  ;;  %v444_v56 = vmul.f32 %v439_v26, %v2069_v15 }
  0x7e   : >> { %v449_v57 = vmul.f32 %v439_v26, %v2076_v18  ;;  %v343_v58 = vmul.f32 %v2183_v47, %v2051_v5  ;;  %v347_v59 = vmul.f32 %v2183_v47, %v2056_v8  ;;  %v467_v60 = vrot.slane %v447_v39, 1 }
  0x7f   : >> { %v348_v61 = vmul.f32 %v2183_v47, %v2065_v13  ;;  %v342_v63 = vmul.f32 %v2183_v47, %v2048_v4  ;;  %v2206_v3 = vsel %vm786_vm1, %v983_v36, %v984_v37  ;;  %v2209_v6 = vsel %vm786_vm1, %v980_v40, %v981_v41 }
  0x80   : >> { %485 = vrot.lane.b32.xlu1 %v2081_v19, %s3487_s27  ;;  %v2212_v7 = vsel %vm786_vm1, %v989_v42, %v990_v43  ;;  %v2215_v9 = vsel %vm786_vm1, %v986_v44, %v987_v45  ;;  %v2218_v11 = vsel %vm786_vm1, %v992_v46, %v993_v48  ;;  %v2221_v12 = vsel %vm394_vm0, %v469_v49, %v470_v50 }
  0x81   : >> { %423 = vrot.lane.b32.xlu0 %v2098_v24, %s3485_s24  ;;  %v460_v14 = vrot.slane %v440_v54, 1  ;;  %v461_v17 = vrot.slane %v445_v55, 1  ;;  %v472_v22 = vrot.slane %v444_v56, 1  ;;  %v473_v23 = vrot.slane %v449_v57, 1 }
  0x82   : >> { %v354_v25 = vadd.f32 %v2201_v62, %v343_v58  ;;  %v358_v26 = vadd.f32 %v2201_v62, %v347_v59  ;;  %v2230_v32 = vsel %vm394_vm0, %v463_v51, %v464_v52  ;;  %v2233_v33 = vsel %vm394_vm0, %v466_v53, %v467_v60 }
  0x83   : >> { %v359_v34 = vadd.f32 %v2201_v62, %v348_v61  ;;  %v353_v35 = vadd.f32 %v2201_v62, %v342_v63  ;;  %v2238_v36 = vstv %s1926_s18  ;;  %v2241_v37 = vstv %s3574_s3  ;;  %s3594_s3 = sld [smem:[#allocation19_spill]] }
  0x84   : >> { %489 = vrot.lane.b32.xlu1 %v2072_v16, %s3487_s27  ;;  %3576 = vst [vmem:[#allocation40_spill] sm:$0xff] %v2241_v37  ;;  %v2244_v38 = vstv %s2016_s21  ;;  %v2247_v39 = vstv %s1934_s25  ;;  %v2250_v40 = vsel %vm394_vm0, %v460_v14, %v461_v17  ;;  %v2253_v41 = vstv %s1964_s23 }
  0x85   : >> { %487 = vrot.lane.b32.xlu0 %v2089_v21, %s3487_s27  ;;  %3577 = vst [vmem:[#allocation41_spill] sm:$0xff] %v2244_v38  ;;  %3578 = vst [vmem:[#allocation42_spill] sm:$0xff] %v2253_v41  ;;  %v2256_v42 = vstv %s1988_s6  ;;  %v875_v43 = vstv %s1956_s11  ;;  %v2262_v44 = vsel %vm394_vm0, %v472_v22, %v473_v23  ;;  %v2265_v45 = vstv %s1954_s10 }
  0x86   : >> { %3580 = vst [vmem:[#allocation43_spill] sm:$0xff] %v2256_v42  ;;  %3581 = vst [vmem:[#allocation44_spill] sm:$0xff] %v2265_v45  ;;  %v364_v46 = vmax.f32 %v354_v25, 0.0  ;;  %v368_v48 = vmax.f32 %v358_v26, 0.0  ;;  %v587_v49 = vstv %s3575_s4  ;;  %v369_v50 = vmax.f32 %v359_v34, 0.0  ;;  %s3620_s4 = sld [smem:[#allocation16_spill]] }
  0x87   : >> { %v2271_v51 = vstv %s2014_s26  ;;  %v363_v52 = vmax.f32 %v353_v35, 0.0  ;;  %v2274_v53 = vmul.f32 %v875_v43, %v2051_v5  ;;  %v2280_v54 = vmul.f32 %v875_v43, %v2038_v0 }
  0x88   : >> { %856 = vrot.lane.b32.xlu1 %v2051_v5, %s3485_s24  ;;  %v1172_v55 = vstv %s3579_s0  ;;  %v2284_v56 = vmul.f32 %v875_v43, %v2041_v1  ;;  %v2287_v57 = vmul.f32 %v875_v43, %v2048_v4  ;;  %v2290_v58 = vmul.f32 %v875_v43, %v2069_v15  ;;  %s3591_s0 = sld [smem:[#allocation25_spill]] }
  0x89   : >> { %854 = vrot.lane.b32.xlu0 %v2048_v4, %s3485_s24  ;;  %3582 = vst [vmem:[#allocation45_spill] sm:$0xff] %v2274_v53  ;;  %3583 = vst [vmem:[#allocation46_spill] sm:$0xff] %v2280_v54  ;;  %v2293_v59 = vstv %s1972_s29  ;;  %v589_v60 = vmul.f32 %v587_v49, %v2051_v5  ;;  %v594_v61 = vmul.f32 %v587_v49, %v2065_v13  ;;  %v2320_v25 = vstv %s1958_s12 }
  0x8a   : >> { %3584 = vst [vmem:[#allocation47_spill] sm:$0xff] %v2284_v56  ;;  %3586 = vst [vmem:[#allocation48_spill] sm:$0xff] %v2287_v57  ;;  %v2300_v63 = vmul.f32 %v2271_v51, %v364_v46  ;;  %v2303_v14 = vmul.f32 %v2271_v51, %v368_v48  ;;  %v2308_v17 = vmul.f32 %v1172_v55, %v2051_v5 }
  0x8b   : >> { %3587 = vst [vmem:[#allocation49_spill] sm:$0xff] %v2290_v58  ;;  %3588 = vst [vmem:[#allocation50_spill] sm:$0xff] %v2293_v59  ;;  %v2314_v22 = vmul.f32 %v2271_v51, %v369_v50  ;;  %v2317_v23 = vmul.f32 %v2271_v51, %v363_v52  ;;  %v2323_v26 = vmul.f32 %v1172_v55, %v2048_v4  ;;  %v611_v52 = vrot.slane %v589_v60, 1 }
  0x8c   : >> { %860 = vrot.lane.b32.xlu1 %v2041_v1, %s3485_s24  ;;  %3590 = vst [vmem:[#allocation51_spill] sm:$0xff] %v2300_v63  ;;  %3592 = vst [vmem:[#allocation52_spill] sm:$0xff] %v2303_v14  ;;  %v2330_v35 = vmul.f32 %v1172_v55, %v2041_v1  ;;  %v2333_v43 = vmul.f32 %v1172_v55, %v2069_v15  ;;  %v595_v46 = vmul.f32 %v587_v49, %v2044_v2 }
  0x8d   : >> { %858 = vrot.lane.b32.xlu0 %v2038_v0, %s3485_s24  ;;  %3593 = vst [vmem:[#allocation53_spill] sm:$0xff] %v2308_v17  ;;  %3596 = vst [vmem:[#allocation55_spill] sm:$0xff] %v2314_v22  ;;  %v597_v14 = vmul.f32 %v587_v49, %v2076_v18 }
  0x8e   : >> { %3597 = vst [vmem:[#allocation56_spill] sm:$0xff] %v2317_v23  ;;  %3598 = vst [vmem:[#allocation57_spill] sm:$0xff] %v2320_v25  ;;  %v2342_v50 = vstv %s3591_s0  ;;  %s3604_s0 = smov 2  }
  0x8f   : >> { %3599 = vst [vmem:[#allocation58_spill] sm:$0xff] %v2323_v26  ;;  %3601 = vst [vmem:[#allocation60_spill] sm:$0xff] %v2330_v35  ;;  %v923_v26 = vstv %s3594_s3  ;;  %v591_v35 = vmul.f32 %v587_v49, %v2041_v1  ;;  %s3605_s3 = sld [smem:[#allocation11_spill]] }
  0x90   : >> { %1140 = vrot.lane.b32.xlu1 %v2048_v4, %s3489_s19  ;;  %3602 = vst [vmem:[#allocation61_spill] sm:$0xff] %v2333_v43  ;;  %3603 = vst [vmem:[#allocation62_spill] sm:$0xff] %v2342_v50  ;;  %v925_v43 = vmul.f32 %v923_v26, %v2051_v5  ;;  %v930_v17 = vmul.f32 %v923_v26, %v2065_v13  ;;  %v615_v50 = vrot.slane %v595_v46, 1 }
  0x91   : >> { %862 = vrot.lane.b32.xlu0 %v2069_v15, %s3485_s24  ;;  %s3500_s24 = smov 126   ;;  %v931_v22 = vmul.f32 %v923_v26, %v2044_v2  ;;  %v924_v63 = vmul.f32 %v923_v26, %v2048_v4  ;;  %v929_v58 = vmul.f32 %v923_v26, %v2056_v8  ;;  %v617_v46 = vrot.slane %v591_v35, 1 }
  0x92   : >> { %v947_v54 = vrot.slane %v925_v43, 1  ;;  %v948_v53 = vrot.slane %v930_v17, 1  ;;  %v621_v43 = vrot.slane %v597_v14, 1 }
  0x93   : >> { %v951_v37 = vrot.slane %v931_v22, 1  ;;  %v945_v17 = vrot.slane %v929_v58, 1 }
  0x94   : >> { %1144 = vrot.lane.b32.xlu1 %v2038_v0, %s3489_s19 }
  0x95   : >> { %1142 = vrot.lane.b32.xlu0 %v2051_v5, %s3489_s19  ;;  %v2376_v59 = vstv %s3605_s3  ;;  %s3614_s3 = sld [smem:[#allocation18_spill]] }
  0x96   : >> { %3607 = vst [vmem:[#allocation63_spill] sm:$0xff] %v2376_v59 }
  0x98   : >> { %1148 = vrot.lane.b32.xlu1 %v2069_v15, %s3489_s19 }
  0x99   : >> { %1146 = vrot.lane.b32.xlu0 %v2041_v1, %s3489_s19 }
  0x9c   : >> { %888 = vrot.lane.b32.xlu1 %v2051_v5, %s3487_s27 }
  0x9d   : >> { %886 = vrot.lane.b32.xlu0 %v2048_v4, %s3487_s27 }
  0xa0   : >> { %892 = vrot.lane.b32.xlu1 %v2041_v1, %s3487_s27 }
  0xa1   : >> { %890 = vrot.lane.b32.xlu0 %v2038_v0, %s3487_s27 }
  0xa4   : >> { %1194 = vrot.lane.b32.xlu1 %v2048_v4, %s3500_s24 }
  0xa5   : >> { %894 = vrot.lane.b32.xlu0 %v2069_v15, %s3487_s27 }
  0xa8   : >> { %1198 = vrot.lane.b32.xlu1 %v2038_v0, %s3500_s24 }
  0xa9   : >> { %1196 = vrot.lane.b32.xlu0 %v2051_v5, %s3500_s24 }
  0xac   : >> { %1202 = vrot.lane.b32.xlu1 %v2069_v15, %s3500_s24 }
  0xad   : >> { %1200 = vrot.lane.b32.xlu0 %v2041_v1, %s3500_s24 }
  0xb0   : >> { %556 = vrot.lane.b32.xlu1 %v2089_v21, %s3489_s19 }
  0xb1   : >> { %554 = vrot.lane.b32.xlu0 %v2081_v19, %s3489_s19 }
  0xb4   : >> { %560 = vrot.lane.b32.xlu1 %v2086_v20, %s3489_s19 }
  0xb5   : >> { %558 = vrot.lane.b32.xlu0 %v2072_v16, %s3489_s19 }
  0xb8   : >> { %491 = vrot.lane.b32.xlu1 %v2086_v20, %s3487_s27 }
  0xb9   : >> { %562 = vrot.lane.b32.xlu0 %v2098_v24, %s3489_s19  ;;  %s3589_s19 = sld [smem:[#allocation28_spill]] }
  0xbc   : >> { %644 = vrot.lane.b32.xlu1 %v2081_v19, %s3500_s24  ;;  %v2277_v19 = vstv %s1974_s30 }
  0xbd   : >> { %493 = vrot.lane.b32.xlu0 %v2098_v24, %s3487_s27  ;;  %s3585_s27 = sld [smem:[#allocation24_spill]] }
  0xbf   : >> { %v2337_v48 = vstv %s3589_s19  ;;  %s3606_s19 = sld [smem:[#allocation26_spill]] }
  0xc0   : >> { %648 = vrot.lane.b32.xlu1 %v2072_v16, %s3500_s24  ;;  %v2311_v16 = vmul.f32 %v1172_v55, %v2038_v0  ;;  %v596_v55 = vmul.f32 %v587_v49, %v2060_v10  ;;  %v1249_v60 = vmul.f32 %v2337_v48, %v2065_v13  ;;  %v1243_v38 = vmul.f32 %v2337_v48, %v2048_v4 }
  0xc1   : >> { %646 = vrot.lane.b32.xlu0 %v2089_v21, %s3500_s24  ;;  %v590_v21 = vmul.f32 %v587_v49, %v2038_v0  ;;  %v1248_v25 = vmul.f32 %v2337_v48, %v2056_v8 }
  0xc2   : >> { %3595 = vst [vmem:[#allocation54_spill] sm:$0xff] %v2311_v16  ;;  %v612_v16 = vrot.slane %v594_v61, 1  ;;  %v926_v61 = vmul.f32 %v923_v26, %v2038_v0  ;;  %v618_v56 = vrot.slane %v596_v55, 1  ;;  %v1267_v57 = vrot.slane %v1249_v60, 1 }
  0xc3   : >> { %v2326_v34 = vstv %s3585_s27  ;;  %v614_v23 = vrot.slane %v590_v21, 1  ;;  %v592_v21 = vmul.f32 %v587_v49, %v2069_v15  ;;  %v944_v55 = vrot.slane %v924_v63, 1  ;;  %s3608_s27 = sld [smem:[#allocation17_spill]] }
  0xc4   : >> { %3600 = vst [vmem:[#allocation59_spill] sm:$0xff] %v2326_v34  ;;  %652 = vrot.lane.b32.xlu1 %v2098_v24, %s3500_s24  ;;  %v1244_v24 = vmul.f32 %v2337_v48, %v2051_v5  ;;  %v593_v34 = vmul.f32 %v587_v49, %v2056_v8  ;;  %v950_v41 = vrot.slane %v926_v61, 1  ;;  %v1263_v14 = vrot.slane %v1243_v38, 1 }
  0xc5   : >> { %650 = vrot.lane.b32.xlu0 %v2086_v20, %s3500_s24  ;;  %v588_v20 = vmul.f32 %v587_v49, %v2048_v4  ;;  %v620_v35 = vrot.slane %v592_v21, 1  ;;  %v2382_v60 = vstv %s3606_s19  ;;  %v2385_v22 = vsel %vm394_vm0, %v614_v23, %v615_v50  ;;  %s3616_s19 = sld [smem:[#allocation14_spill]]  ;;  %s3618_s24 = smov 1  }
  0xc6   : >> { %v1266_v49 = vrot.slane %v1244_v24, 1  ;;  %v609_v45 = vrot.slane %v593_v34, 1  ;;  %v2379_v24 = vsel %vm394_vm0, %v611_v52, %v612_v16  ;;  %3610 = vst [vmem:[#allocation65_spill] sm:$0xff] %v2382_v60  ;;  %3611 = vst [vmem:[#allocation66_spill] sm:$0xff] %v2385_v22  ;;  %v2388_v34 = vsel %vm394_vm0, %v617_v46, %v618_v56 }
  0xc7   : >> { %v608_v42 = vrot.slane %v588_v20, 1  ;;  %3609 = vst [vmem:[#allocation64_spill] sm:$0xff] %v2379_v24  ;;  %3612 = vst [vmem:[#allocation67_spill] sm:$0xff] %v2388_v34  ;;  %v1264_v63 = vrot.slane %v1248_v25, 1  ;;  %v1247_v61 = vmul.f32 %v2337_v48, %v2069_v15  ;;  %v1252_v16 = vmul.f32 %v2337_v48, %v2076_v18 }
  0xc8   : >> { %1312 = vrot.lane.b32.xlu1 %v2206_v3, %s3604_s0  ;;  %v2391_v58 = vsel %vm394_vm0, %v1266_v49, %v1267_v57  ;;  %v2398_v52 = vsel %vm394_vm0, %v947_v54, %v948_v53  ;;  %v2401_v23 = vsel %vm394_vm0, %v950_v41, %v951_v37  ;;  %v2409_v56 = vsel %vm394_vm0, %v620_v35, %v621_v43 }
  0xc9   : >> { %1310 = vrot.lane.b32.xlu0 %v2209_v6, %s3604_s0  ;;  %3613 = vst [vmem:[#allocation68_spill] sm:$0xff] %v2391_v58  ;;  %3615 = vst [vmem:[#allocation69_spill] sm:$0xff] %v2398_v52  ;;  %v2406_v38 = vsel %vm394_vm0, %v608_v42, %v609_v45  ;;  %v2412_v57 = vsel %vm394_vm0, %v944_v55, %v945_v17  ;;  %v2415_v25 = vstv %s3608_s27  ;;  %v2431_v20 = vstv %s3614_s3  ;;  %s3625_s27 = sld [smem:[#allocation29_spill]]  ;;  %s3636_s3 = sld [smem:[#allocation32_spill]] }
  0xca   : >> { %3617 = vst [vmem:[#allocation70_spill] sm:$0xff] %v2401_v23  ;;  %3619 = vst [vmem:[#allocation71_spill] sm:$0xff] %v2406_v38  ;;  %v927_v37 = vmul.f32 %v923_v26, %v2041_v1  ;;  %v932_v41 = vmul.f32 %v923_v26, %v2060_v10  ;;  %v720_v42 = vmul.f32 %v2415_v25, %v2048_v4  ;;  %v1275_v46 = vrot.slane %v1247_v61, 1 }
  0xcb   : >> { %3621 = vst [vmem:[#allocation72_spill] sm:$0xff] %v2409_v56  ;;  %v725_v45 = vmul.f32 %v2415_v25, %v2056_v8  ;;  %v2426_v53 = vsel %vm394_vm0, %v1263_v14, %v1264_v63  ;;  %v928_v54 = vmul.f32 %v923_v26, %v2069_v15  ;;  %v933_v50 = vmul.f32 %v923_v26, %v2076_v18 }
  0xcc   : >> { %1316 = vrot.lane.b32.xlu1 %v2212_v7, %s3604_s0  ;;  %3622 = vst [vmem:[#allocation73_spill] sm:$0xff] %v2426_v53  ;;  %v2434_v21 = vstv %s3616_s19  ;;  %v1276_v49 = vrot.slane %v1252_v16, 1  ;;  %v2437_v35 = vstv %s3620_s4  ;;  %v740_v43 = vrot.slane %v720_v42, 1  ;;  %s3632_s4 = smov 127   ;;  %s3637_s19 = smov 126  }
  0xcd   : >> { %1314 = vrot.lane.b32.xlu0 %v2215_v9, %s3604_s0  ;;  %3623 = vst [vmem:[#allocation74_spill] sm:$0xff] %v2434_v21  ;;  %v741_v55 = vrot.slane %v725_v45, 1  ;;  %v766_v17 = vmul.f32 %v2431_v20, %v2048_v4  ;;  %v771_v26 = vmul.f32 %v2431_v20, %v2056_v8  ;;  %v344_v14 = vmul.f32 %v2183_v47, %v2038_v0 }
  0xce   : >> { %v349_v63 = vmul.f32 %v2183_v47, %v2044_v2  ;;  %v953_v61 = vrot.slane %v927_v37, 1  ;;  %v954_v16 = vrot.slane %v932_v41, 1  ;;  %v2453_v42 = vmul.f32 %v2337_v48, %v2038_v0 }
  0xcf   : >> { %v2457_v45 = vmul.f32 %v2337_v48, %v2041_v1  ;;  %v956_v21 = vrot.slane %v928_v54, 1  ;;  %v957_v53 = vrot.slane %v933_v50, 1  ;;  %v2463_v58 = vstv %s2018_s7 }
  0xd0   : >> { %1000 = vrot.lane.b32.xlu1 %v2209_v6, %s3618_s24  ;;  %3627 = vst [vmem:[#allocation76_spill] sm:$0xff] %v2463_v58  ;;  %v2466_v56 = vstv %s3625_s27  ;;  %v714_v37 = vmul.f32 %v2437_v35, %v2048_v4  ;;  %v2473_v41 = vsel %vm394_vm0, %v1275_v46, %v1276_v49  ;;  %v742_v34 = vsel %vm394_vm0, %v740_v43, %v741_v55  ;;  %s3643_s27 = sld [smem:[#allocation20_spill]] }
  0xd1   : >> { %1318 = vrot.lane.b32.xlu0 %v2218_v11, %s3604_s0  ;;  %s3624_s0 = sld [smem:[#allocation36_spill]]  ;;  %3628 = vst [vmem:[#allocation77_spill] sm:$0xff] %v2466_v56  ;;  %3629 = vst [vmem:[#allocation78_spill] sm:$0xff] %v2473_v41  ;;  %v787_v22 = vrot.slane %v766_v17, 2  ;;  %v788_v54 = vrot.slane %v771_v26, 2  ;;  %v355_v50 = vadd.f32 %v2201_v62, %v344_v14  ;;  %v360_v58 = vadd.f32 %v2201_v62, %v349_v63 }
  0xd2   : >> { %v2486_v56 = vmul.f32 %v2337_v48, %v2060_v10  ;;  %v346_v46 = vmul.f32 %v2183_v47, %v2069_v15  ;;  %v721_v55 = vmul.f32 %v2415_v25, %v2051_v5  ;;  %v2495_v17 = vsel %vm394_vm0, %v953_v61, %v954_v16 }
  0xd3   : >> { %3630 = vst [vmem:[#allocation79_spill] sm:$0xff] %v2495_v17  ;;  %v2498_v26 = vsel %vm394_vm0, %v956_v21, %v957_v53  ;;  %v760_v14 = vadd.f32 %v742_v34, %v714_v37  ;;  %v351_v63 = vmul.f32 %v2183_v47, %v2076_v18  ;;  %v789_v43 = vsel %vm786_vm1, %v787_v22, %v788_v54 }
  0xd4   : >> { %1004 = vrot.lane.b32.xlu1 %v2215_v9, %s3618_s24  ;;  %3631 = vst [vmem:[#allocation80_spill] sm:$0xff] %v2498_v26  ;;  %v722_v49 = vmul.f32 %v2415_v25, %v2038_v0  ;;  %v727_v61 = vmul.f32 %v2415_v25, %v2044_v2  ;;  %v345_v34 = vmul.f32 %v2183_v47, %v2041_v1  ;;  %v365_v21 = vmax.f32 %v355_v50, 0.0 }
  0xd5   : >> { %1002 = vrot.lane.b32.xlu0 %v2206_v3, %s3618_s24  ;;  %v350_v53 = vmul.f32 %v2183_v47, %v2060_v10  ;;  %v370_v16 = vmax.f32 %v360_v58, 0.0  ;;  %v357_v37 = vadd.f32 %v2201_v62, %v346_v46  ;;  %v1273_v54 = vrot.slane %v2486_v56, 1 }
  0xd6   : >> { %v743_v41 = vrot.slane %v721_v55, 1  ;;  %v807_v26 = vadd.f32 %v789_v43, %v760_v14  ;;  %v767_v17 = vmul.f32 %v2431_v20, %v2051_v5  ;;  %v772_v23 = vmul.f32 %v2431_v20, %v2065_v13 }
  0xd7   : >> { %v2460_v38 = vstv %s3624_s0  ;;  %v746_v47 = vrot.slane %v722_v49, 1  ;;  %v747_v58 = vrot.slane %v727_v61, 1  ;;  %v773_v56 = vmul.f32 %v2431_v20, %v2044_v2  ;;  %s3642_s0 = sld [smem:[#allocation30_spill]] }
  0xd8   : >> { %3626 = vst [vmem:[#allocation75_spill] sm:$0xff] %v2460_v38  ;;  %1008 = vrot.lane.b32.xlu1 %v2218_v11, %s3618_s24  ;;  %v2482_v38 = vmul.f32 %v2337_v48, %v2044_v2  ;;  %v726_v48 = vmul.f32 %v2415_v25, %v2065_v13  ;;  %v362_v50 = vadd.f32 %v2201_v62, %v351_v63  ;;  %v2536_v55 = vstv %s2008_s14 }
  0xd9   : >> { %1006 = vrot.lane.b32.xlu0 %v2212_v7, %s3618_s24  ;;  %s3633_s24 = sld [smem:[#allocation21_spill]]  ;;  %v356_v46 = vadd.f32 %v2201_v62, %v345_v34  ;;  %v361_v43 = vadd.f32 %v2201_v62, %v350_v53  ;;  %v2539_v49 = vmul.f32 %v2271_v51, %v365_v21  ;;  %v2542_v14 = vmul.f32 %v2271_v51, %v370_v16 }
  0xda   : >> { %v1270_v22 = vrot.slane %v2482_v38, 1  ;;  %v744_v24 = vrot.slane %v726_v48, 1  ;;  %v768_v38 = vmul.f32 %v2431_v20, %v2038_v0  ;;  %v715_v61 = vmul.f32 %v2437_v35, %v2051_v5 }
  0xdb   : >> { %3634 = vst [vmem:[#allocation81_spill] sm:$0xff] %v2539_v49  ;;  %3635 = vst [vmem:[#allocation82_spill] sm:$0xff] %v2542_v14  ;;  %v716_v63 = vmul.f32 %v2437_v35, %v2038_v0  ;;  %v790_v62 = vrot.slane %v767_v17, 2  ;;  %v791_v53 = vrot.slane %v772_v23, 2  ;;  %v813_v21 = vadd.f32 %v2536_v55, %v807_v26 }
  0xdc   : >> { %1074 = vrot.lane.b32.xlu1 %v2206_v3, %s3632_s4  ;;  %v745_v34 = vsel %vm394_vm0, %v743_v41, %v744_v24  ;;  %v748_v16 = vsel %vm394_vm0, %v746_v47, %v747_v58  ;;  %v793_v14 = vrot.slane %v768_v38, 2  ;;  %v794_v49 = vrot.slane %v773_v56, 2 }
  0xdd   : >> { %1072 = vrot.lane.b32.xlu0 %v2209_v6, %s3632_s4  ;;  %v367_v60 = vmax.f32 %v357_v37, 0.0  ;;  %v372_v59 = vmax.f32 %v362_v50, 0.0  ;;  %v2562_v23 = vstv %s3636_s3  ;;  %v761_v26 = vadd.f32 %v745_v34, %v715_v61  ;;  %s3648_s3 = sld [smem:[#allocation37_spill]] }
  0xde   : >> { %v1348_v41 = vmul.f32 %v2562_v23, %v2048_v4  ;;  %v1353_v17 = vmul.f32 %v2562_v23, %v2056_v8  ;;  %v366_v47 = vmax.f32 %v356_v46, 0.0  ;;  %v371_v58 = vmax.f32 %v361_v43, 0.0 }
  0xdf   : >> { %v2545_v48 = vstv %s3633_s24  ;;  %v762_v37 = vadd.f32 %v748_v16, %v716_v63  ;;  %v792_v38 = vsel %vm786_vm1, %v790_v62, %v791_v53  ;;  %v3638_v56 = vrot.slane %v2453_v42, 1  ;;  %s3647_s24 = sld [smem:[#allocation22_spill]] }
  0xe0   : >> { %1078 = vrot.lane.b32.xlu1 %v2212_v7, %s3632_s4  ;;  %v1027_v24 = vmul.f32 %v2545_v48, %v2048_v4  ;;  %v3640_v52 = vrot.slane %v2457_v45, 1  ;;  %v795_v46 = vsel %vm786_vm1, %v793_v14, %v794_v49  ;;  %v2590_v42 = vmul.f32 %v2271_v51, %v372_v59 }
  0xe1   : >> { %1076 = vrot.lane.b32.xlu0 %v2215_v9, %s3632_s4  ;;  %v2576_v50 = vsel %vm394_vm0, %v3638_v56, %v1270_v22  ;;  %v2593_v22 = vstv %s2020_s28  ;;  %v1368_v43 = vrot.slane %v1348_v41, 2  ;;  %v1369_v49 = vrot.slane %v1353_v17, 2 }
  0xe2   : >> { %3639 = vst [vmem:[#allocation83_spill] sm:$0xff] %v2576_v50  ;;  %v2581_v4 = vsel %vm394_vm0, %v3640_v52, %v1273_v54  ;;  %3646 = vst [vmem:[#allocation86_spill] sm:$0xff] %v2590_v42  ;;  %v1047_v52 = vrot.slane %v1027_v24, 2  ;;  %v808_v14 = vadd.f32 %v792_v38, %v761_v26  ;;  %v2596_v61 = vmul.f32 %v2271_v51, %v366_v47 }
  0xe3   : >> { %3641 = vst [vmem:[#allocation84_spill] sm:$0xff] %v2581_v4  ;;  %v2602_v59 = vstv %s3642_s0  ;;  %v809_v63 = vadd.f32 %v795_v46, %v762_v37  ;;  %v2607_v34 = vstv %s3643_s27  ;;  %v2625_v16 = vstv %s2022_s9  ;;  %s3781_s27 = sld [smem:[#allocation15_spill]] }
  0xe4   : >> { %1404 = vrot.lane.b32.xlu1 %v2209_v6, %s3637_s19  ;;  %v1032_v6 = vmul.f32 %v2545_v48, %v2056_v8  ;;  %v818_v8 = vmax.f32 %v813_v21, 0.0  ;;  %3649 = vst [vmem:[#allocation87_spill] sm:$0xff] %v2596_v61  ;;  %3651 = vst [vmem:[#allocation89_spill] sm:$0xff] %v2602_v59  ;;  %v1033_v24 = vmul.f32 %v2545_v48, %v2065_v13 }
  0xe5   : >> { %1080 = vrot.lane.b32.xlu0 %v2218_v11, %s3632_s4  ;;  %s3645_s4 = sld [smem:[#allocation31_spill]]  ;;  %3653 = vst [vmem:[#allocation90_spill] sm:$0xff] %v2607_v34  ;;  %v2616_v21 = vstv %s3647_s24  ;;  %3658 = vst [vmem:[#allocation95_spill] sm:$0xff] %v2625_v16  ;;  %v2635_v17 = vsel %vm786_vm1, %v1368_v43, %v1369_v49  ;;  %v814_v26 = vadd.f32 %v2536_v55, %v808_v14 }
  0xe6   : >> { %v1048_v54 = vrot.slane %v1032_v6, 2  ;;  %v2613_v53 = vmul.f32 %v2593_v22, %v818_v8  ;;  %3656 = vst [vmem:[#allocation93_spill] sm:$0xff] %v2616_v21  ;;  %3660 = vst [vmem:[#allocation97_spill] sm:$0xff] %v2635_v17  ;;  %v815_v37 = vadd.f32 %v2536_v55, %v809_v63  ;;  %v2648_v38 = vmul.f32 %v2437_v35, %v2041_v1 }
  0xe7   : >> { %v2652_v56 = vmul.f32 %v2437_v35, %v2069_v15  ;;  %v1029_v46 = vmul.f32 %v2545_v48, %v2038_v0  ;;  %v1051_v14 = vrot.slane %v1033_v24, 2  ;;  %v819_v8 = vmax.f32 %v814_v26, 0.0 }
  0xe8   : >> { %1408 = vrot.lane.b32.xlu1 %v2215_v9, %s3637_s19  ;;  %v2587_v9 = vmul.f32 %v2271_v51, %v367_v60  ;;  %v2599_v60 = vmul.f32 %v2271_v51, %v371_v58  ;;  %3655 = vst [vmem:[#allocation92_spill] sm:$0xff] %v2613_v53  ;;  %v2622_v51 = vstv %s3648_s3  ;;  %v2632_v41 = vsel %vm786_vm1, %v1047_v52, %v1048_v54 }
  0xe9   : >> { %1406 = vrot.lane.b32.xlu0 %v2206_v3, %s3637_s19  ;;  %3657 = vst [vmem:[#allocation94_spill] sm:$0xff] %v2622_v51  ;;  %3659 = vst [vmem:[#allocation96_spill] sm:$0xff] %v2632_v41  ;;  %v1034_v52 = vmul.f32 %v2545_v48, %v2044_v2  ;;  %v723_v54 = vmul.f32 %v2415_v25, %v2041_v1  ;;  %v1349_v16 = vmul.f32 %v2562_v23, %v2051_v5 }
  0xea   : >> { %3644 = vst [vmem:[#allocation85_spill] sm:$0xff] %v2587_v9  ;;  %v420_v45 = vpop.permute.xlu1 %419  ;;  %3650 = vst [vmem:[#allocation88_spill] sm:$0xff] %v2599_v60  ;;  %v1350_v51 = vmul.f32 %v2562_v23, %v2038_v0  ;;  %v820_v21 = vmax.f32 %v815_v37, 0.0  ;;  %v728_v24 = vmul.f32 %v2415_v25, %v2060_v10  ;;  %v1053_v26 = vrot.slane %v1029_v46, 2 }
  0xeb   : >> { %v416_v3 = vpop.permute.xlu0 %415  ;;  %v2610_v62 = vstv %s3645_s4  ;;  %v729_v0 = vmul.f32 %v2415_v25, %v2076_v18  ;;  %v749_v17 = vrot.slane %v723_v54, 1  ;;  %v1054_v41 = vrot.slane %v1034_v52, 2 }
  0xec   : >> { %1412 = vrot.lane.b32.xlu1 %v2218_v11, %s3637_s19  ;;  %3654 = vst [vmem:[#allocation91_spill] sm:$0xff] %v2610_v62  ;;  %v1028_v11 = vmul.f32 %v2545_v48, %v2051_v5  ;;  %v2703_v46 = vmul.f32 %v2593_v22, %v819_v8  ;;  %v1374_v54 = vrot.slane %v1350_v51, 2  ;;  %v2706_v34 = vmul.f32 %v2593_v22, %v820_v21 }
  0xed   : >> { %1410 = vrot.lane.b32.xlu0 %v2212_v7, %s3637_s19  ;;  %v2638_v7 = vstv %s3652_s5  ;;  %v750_v59 = vrot.slane %v728_v24, 1  ;;  %v769_v24 = vmul.f32 %v2431_v20, %v2041_v1  ;;  %s3700_s5 = sld [smem:[#allocation38_spill]]  ;;  %s3779_s19 = sld [smem:[#allocation39_spill]] }
  0xee   : >> { %v422_v6 = vpop.permute.xlu1 %421  ;;  %3661 = vst [vmem:[#allocation98_spill] sm:$0xff] %v2638_v7  ;;  %v1050_v35 = vrot.slane %v1028_v11, 2  ;;  %v724_v7 = vmul.f32 %v2415_v25, %v2069_v15  ;;  %v1355_v11 = vmul.f32 %v2562_v23, %v2044_v2  ;;  %3664 = vst [vmem:[#allocation101_spill] sm:$0xff] %v2703_v46  ;;  %v1371_v25 = vrot.slane %v1349_v16, 2 }
  0xef   : >> { %v2643_v47 = vsel %vm427_vm2, %v420_v45, %v422_v6  ;;  %v418_v58 = vpop.permute.xlu0 %417  ;;  %3665 = vst [vmem:[#allocation102_spill] sm:$0xff] %v2706_v34  ;;  %v753_v16 = vrot.slane %v729_v0, 1  ;;  %v751_v50 = vsel %vm394_vm0, %v749_v17, %v750_v59  ;;  %v796_v17 = vrot.slane %v769_v24, 2 }
  0xf0   : >> { %v2663_v43 = vsel %vm427_vm2, %v418_v58, %v420_v45  ;;  %v2667_v49 = vsel %vm427_vm2, %v416_v3, %v418_v58  ;;  %v1354_v58 = vmul.f32 %v2562_v23, %v2065_v13  ;;  %v2696_v2 = vsel %vm786_vm1, %v1050_v35, %v1051_v14 }
  0xf1   : >> { %v435_v37 = vmul.f32 %v2148_v27, %v2667_v49  ;;  %3663 = vst [vmem:[#allocation100_spill] sm:$0xff] %v2696_v2  ;;  %v752_v8 = vrot.slane %v724_v7, 1  ;;  %v774_v7 = vmul.f32 %v2431_v20, %v2060_v10  ;;  %v2740_v2 = vsel %vm786_vm1, %v1053_v26, %v1054_v41 }
  0xf2   : >> { %v2669_v63 = vpop.permute.xlu1 %485  ;;  %3666 = vst [vmem:[#allocation103_spill] sm:$0xff] %v2740_v2  ;;  %v2783_v24 = vmul.f32 %v2545_v48, %v2076_v18 }
  0xf3   : >> { %3662 = vst [vmem:[#allocation99_spill] sm:$0xff] %v2669_v63  ;;  %v424_v45 = vpop.permute.xlu0 %423  ;;  %v481_v51 = vadd.f32 %v2230_v32, %v435_v37  ;;  %v775_v32 = vmul.f32 %v2431_v20, %v2076_v18  ;;  %v2803_v18 = vmul.f32 %v2161_v31, %v2643_v47  ;;  %s1684_s0 = smul.u32 40, %s3779_s19  ;;  %s327_s19 = sadd.s32 1, %s3779_s19  }
  0xf4   : >> { %v2685_v5 = vsel %vm427_vm2, %v422_v6, %v424_v45  ;;  %v2693_v13 = vsel %vm427_vm2, %v424_v45, %v416_v3  ;;  %v1372_v3 = vrot.slane %v1354_v58, 2  ;;  %v1375_v45 = vrot.slane %v1355_v11, 2  ;;  %p324_p7 = scmp.ge.s32.totalorder %s327_s19, 2  }
  0xf5   : >> { %v434_v6 = vmul.f32 %v2148_v27, %v2693_v13  ;;  %s3453_s4 = scalar_lea.vmem %s3781_s27, %s1684_s0 }
  0xf6   : >> { %v2700_v53 = vpop.permute.xlu1 %489  ;;  %v2756_v41 = vsel %vm786_vm1, %v1371_v25, %v1372_v3  ;;  %v2759_v26 = vsel %vm786_vm1, %v1374_v54, %v1375_v45  ;;  %v2771_v54 = vmul.f32 %v2545_v48, %v2060_v10  ;;  %v436_v10 = vmul.f32 %v2148_v27, %v2663_v43 }
  0xf7   : >> { %v488_v62 = vpop.permute.xlu0 %487  ;;  %v480_v21 = vadd.f32 %v2250_v40, %v434_v6  ;;  %3667 = vst [vmem:[#allocation104_spill] sm:$0xff] %v2756_v41  ;;  %3668 = vst [vmem:[#allocation105_spill] sm:$0xff] %v2759_v26  ;;  %v437_v6 = vmul.f32 %v2148_v27, %v2643_v47  ;;  %v2868_v41 = vmul.f32 %v2161_v31, %v2685_v5 }
  0xf8   : >> { %v2711_v52 = vsel %vm495_vm3, %v488_v62, %v2700_v53  ;;  %v2716_v35 = vsel %vm495_vm3, %v2669_v63, %v488_v62  ;;  %v770_v62 = vmul.f32 %v2431_v20, %v2069_v15  ;;  %v754_v20 = vsel %vm394_vm0, %v752_v8, %v753_v16 }
  0xf9   : >> { %v502_v14 = vmul.f32 %v2238_v36, %v2716_v35  ;;  %v503_v58 = vmul.f32 %v2238_v36, %v2711_v52  ;;  %v797_v8 = vrot.slane %v774_v7, 2  ;;  %v764_v25 = vadd.f32 %v754_v20, %v2652_v56  ;;  %3674 = vst [vmem:[#allocation111_spill] sm:$0xff] %v2868_v41 }
  0xfa   : >> { %v857_v11 = vpop.permute.xlu1 %856  ;;  %v799_v16 = vrot.slane %v770_v62, 2  ;;  %v2795_v62 = vmul.f32 %v2562_v23, %v2041_v1  ;;  %v2816_v20 = vmul.f32 %v2155_v29, %v2663_v43  ;;  %v1057_v46 = vrot.slane %v2771_v54, 2 }
  0xfb   : >> { %v2732_v40 = vadd.f32 %v502_v14, %v480_v21  ;;  %v2734_v0 = vadd.f32 %v503_v58, %v481_v51  ;;  %v2736_v37 = vpop.permute.xlu0 %854  ;;  %v2751_v51 = vmul.f32 %v2545_v48, %v2041_v1  ;;  %v2763_v14 = vmul.f32 %v2545_v48, %v2069_v15 }
  0xfc   : >> { %v2745_v4 = vsel %vm427_vm2, %v2736_v37, %v857_v11  ;;  %v800_v58 = vrot.slane %v775_v32, 2  ;;  %v763_v21 = vadd.f32 %v751_v50, %v2648_v38  ;;  %v2788_v38 = vmul.f32 %v2155_v29, %v2643_v47 }
  0xfd   : >> { %v2808_v32 = vadd.f32 %v2221_v12, %v437_v6  ;;  %v2812_v1 = vmul.f32 %v2155_v29, %v2667_v49  ;;  %v2826_v12 = vmul.f32 %v2158_v30, %v2663_v43  ;;  %v2830_v6 = vmul.f32 %v2161_v31, %v2667_v49 }
  0xfe   : >> { %v861_v59 = vpop.permute.xlu1 %860  ;;  %v801_v7 = vsel %vm786_vm1, %v799_v16, %v800_v58  ;;  %v2837_v16 = vadd.f32 %v2233_v33, %v436_v10  ;;  %v2845_v58 = vmul.f32 %v2155_v29, %v2685_v5  ;;  %v2849_v50 = vmul.f32 %v2158_v30, %v2685_v5 }
  0xff   : >> { %v859_v2 = vpop.permute.xlu0 %858  ;;  %3669 = vst [vmem:[#allocation106_spill] sm:$0xff] %v2808_v32  ;;  %v2857_v33 = vmul.f32 %v2158_v30, %v2693_v13 }
 0x100   : >> { %v2775_v3 = vsel %vm427_vm2, %v859_v2, %v861_v59  ;;  %v2779_v45 = vsel %vm427_vm2, %v857_v11, %v859_v2  ;;  %v2799_v2 = vmul.f32 %v2158_v30, %v2643_v47  ;;  %v798_v11 = vsel %vm786_vm1, %v796_v17, %v797_v8  ;;  %3670 = vst [vmem:[#allocation107_spill] sm:$0xff] %v2845_v58 }
 0x101   : >> { %v438_v47 = vmul.f32 %v2148_v27, %v2685_v5  ;;  %v2822_v17 = vmul.f32 %v2158_v30, %v2667_v49  ;;  %v2841_v27 = vmul.f32 %v2161_v31, %v2663_v43  ;;  %v2853_v49 = vmul.f32 %v2155_v29, %v2693_v13 }
 0x102   : >> { %v1141_v48 = vpop.permute.xlu1 %1140  ;;  %v2861_v43 = vmul.f32 %v2161_v31, %v2693_v13  ;;  %v810_v10 = vadd.f32 %v798_v11, %v763_v21  ;;  %v811_v29 = vadd.f32 %v801_v7, %v764_v25  ;;  %v2873_v30 = vmul.f32 %v2247_v39, %v2716_v35  ;;  %v3676_v25 = vld [vmem:[#allocation50_spill] sm:$0xff]  ;;  %v3677_v7 = vld [vmem:[#allocation40_spill] sm:$0xff] }
 0x103   : >> { %v863_v56 = vpop.permute.xlu0 %862  ;;  %3671 = vst [vmem:[#allocation108_spill] sm:$0xff] %v2853_v49  ;;  %v2864_v26 = vadd.f32 %v2262_v44, %v438_v47  ;;  %v1163_v13 = vmul.f32 %v2277_v19, %v2745_v4  ;;  %v1164_v31 = vmul.f32 %v2277_v19, %v2779_v45  ;;  %v513_v47 = vadd.f32 %v3677_v7, %v2732_v40 }
 0x104   : >> { %v2834_v8 = vsel %vm427_vm2, %v861_v59, %v863_v56  ;;  %3672 = vst [vmem:[#allocation109_spill] sm:$0xff] %v2861_v43  ;;  %3675 = vst [vmem:[#allocation112_spill] sm:$0xff] %v2873_v30  ;;  %v868_v5 = vsel %vm427_vm2, %v863_v56, %v2736_v37  ;;  %v514_v60 = vadd.f32 %v3677_v7, %v2734_v0  ;;  %v3678_v37 = vld [vmem:[#allocation42_spill] sm:$0xff]  ;;  %v1060_v43 = vrot.slane %v2783_v24, 2 }
 0x105   : >> { %3673 = vst [vmem:[#allocation110_spill] sm:$0xff] %v2864_v26  ;;  %v816_v42 = vadd.f32 %v2536_v55, %v810_v10  ;;  %v2901_v56 = vmul.f32 %v3678_v37, %v2716_v35  ;;  %v1162_v9 = vmul.f32 %v2277_v19, %v868_v5  ;;  %v817_v26 = vadd.f32 %v2536_v55, %v811_v29  ;;  %v3680_v55 = vld [vmem:[#allocation43_spill] sm:$0xff] }
 0x106   : >> { %v1145_v59 = vpop.permute.xlu1 %1144  ;;  %v519_v32 = vmax.f32 %v514_v60, 0.0  ;;  %v2928_v29 = vmul.f32 %v3680_v55, %v2716_v35  ;;  %v3683_v60 = vrot.slane %v2751_v51, 2 }
 0x107   : >> { %v1143_v34 = vpop.permute.xlu0 %1142 }
 0x108   : >> { %v1152_v21 = vsel %vm564_vm4, %v1143_v34, %v1145_v59  ;;  %v1153_v44 = vsel %vm564_vm4, %v1141_v48, %v1143_v34  ;;  %v2894_v34 = vmul.f32 %v2247_v39, %v2711_v52  ;;  %3681 = vst [vmem:[#allocation50_spill] sm:$0xff] %v2928_v29  ;;  %v822_v29 = vmax.f32 %v817_v26, 0.0 }
 0x109   : >> { %v1157_v54 = vmul.f32 %v3676_v25, %v1153_v44  ;;  %v1158_v11 = vmul.f32 %v3676_v25, %v1152_v21 }
 0x10a   : >> { %v2896_v61 = vpop.permute.xlu1 %1148  ;;  %v2987_v58 = vmul.f32 %v2593_v22, %v822_v29 }
 0x10b   : >> { %v2903_v44 = vadd.f32 %v1163_v13, %v1157_v54  ;;  %v2905_v21 = vadd.f32 %v1164_v31, %v1158_v11  ;;  %v1154_v40 = vsel %vm564_vm4, %v2896_v61, %v1141_v48  ;;  %v1147_v0 = vpop.permute.xlu0 %1146  ;;  %v1165_v13 = vmul.f32 %v2277_v19, %v2775_v3  ;;  %v3679_v54 = vld [vmem:[#allocation44_spill] sm:$0xff] }
 0x10c   : >> { %v1156_v30 = vmul.f32 %v3676_v25, %v1154_v40  ;;  %v1151_v10 = vsel %vm564_vm4, %v1145_v59, %v1147_v0  ;;  %v870_v31 = vmul.f32 %v3679_v54, %v868_v5  ;;  %v518_v48 = vmax.f32 %v513_v47, 0.0  ;;  %v3685_v47 = vld [vmem:[#allocation48_spill] sm:$0xff] }
 0x10d   : >> { %v1159_v11 = vmul.f32 %v3676_v25, %v1151_v10  ;;  %v821_v40 = vmax.f32 %v816_v42, 0.0  ;;  %v2924_v59 = vmul.f32 %v3678_v37, %v2711_v52  ;;  %v871_v5 = vmul.f32 %v3679_v54, %v2745_v4 }
 0x10e   : >> { %v2920_v41 = vadd.f32 %v1162_v9, %v1156_v30  ;;  %v889_v49 = vpop.permute.xlu1 %888  ;;  %v2936_v9 = vmul.f32 %v3680_v55, %v2711_v52  ;;  %v2945_v30 = vsel %vm786_vm1, %v3683_v60, %v1057_v46  ;;  %v2949_v4 = vmul.f32 %v2562_v23, %v2069_v15 }
 0x10f   : >> { %v2932_v10 = vadd.f32 %v1165_v13, %v1159_v11  ;;  %v887_v24 = vpop.permute.xlu0 %886  ;;  %3684 = vst [vmem:[#allocation44_spill] sm:$0xff] %v2945_v30  ;;  %v872_v35 = vmul.f32 %v3679_v54, %v2779_v45  ;;  %v881_v52 = vadd.f32 %v3685_v47, %v870_v31  ;;  %v3686_v13 = vld [vmem:[#allocation57_spill] sm:$0xff]  ;;  %v2959_v30 = vmul.f32 %v2593_v22, %v821_v40 }
 0x110   : >> { %3682 = vst [vmem:[#allocation42_spill] sm:$0xff] %v2936_v9  ;;  %v2940_v42 = vsel %vm495_vm3, %v887_v24, %v889_v49  ;;  %v3687_v9 = vld [vmem:[#allocation41_spill] sm:$0xff]  ;;  %v3688_v15 = vrot.slane %v2763_v14, 2  ;;  %v873_v47 = vmul.f32 %v3679_v54, %v2775_v3  ;;  %v874_v40 = vmul.f32 %v3679_v54, %v2834_v8  ;;  %v3691_v3 = vld [vmem:[#allocation46_spill] sm:$0xff] }
 0x111   : >> { %v902_v11 = vmul.f32 %v3686_v13, %v2940_v42  ;;  %v524_v51 = vmul.f32 %v3687_v9, %v518_v48  ;;  %v525_v46 = vmul.f32 %v3687_v9, %v519_v32  ;;  %v3690_v45 = vld [vmem:[#allocation45_spill] sm:$0xff]  ;;  %v1738_v48 = vld [vmem:[%s2035_s2 + $0x40] sm:$0x3] }
 0x112   : >> { %v893_v60 = vpop.permute.xlu1 %892  ;;  %v2964_v55 = vsel %vm786_vm1, %v3688_v15, %v1060_v43  ;;  %v882_v31 = vadd.f32 %v3690_v45, %v871_v5  ;;  %v1356_v32 = vmul.f32 %v1738_v48, %v2562_v23  ;;  %v1739_v5 = vld [vmem:[%s2035_s2 + $0x48] sm:$0x3]  ;;  %s3697_s2 = sld [smem:[#allocation34_spill]] }
 0x113   : >> { %3689 = vst [vmem:[#allocation48_spill] sm:$0xff] %v2964_v55  ;;  %v907_v26 = vadd.f32 %v902_v11, %v881_v52  ;;  %v891_v63 = vpop.permute.xlu0 %890  ;;  %v1357_v15 = vmul.f32 %v1739_v5, %v2562_v23  ;;  %v883_v52 = vadd.f32 %v3691_v3, %v872_v35  ;;  %v534_v55 = vrot.slane %v524_v51, 7 }
 0x114   : >> { %v897_v14 = vsel %vm495_vm3, %v891_v63, %v893_v60  ;;  %v898_v43 = vsel %vm495_vm3, %v889_v49, %v891_v63  ;;  %v535_v9 = vrot.slane %v525_v46, 7  ;;  %v3692_v49 = vld [vmem:[#allocation47_spill] sm:$0xff]  ;;  %v1150_v51 = vsel %vm564_vm4, %v1147_v0, %v2896_v61 }
 0x115   : >> { %v918_v11 = vadd.f32 %v2857_v33, %v907_v26  ;;  %v903_v45 = vmul.f32 %v3686_v13, %v898_v43  ;;  %v904_v48 = vmul.f32 %v3686_v13, %v897_v14  ;;  %v884_v7 = vadd.f32 %v3692_v49, %v873_v47  ;;  %v3693_v26 = vld [vmem:[#allocation49_spill] sm:$0xff] }
 0x116   : >> { %v2984_v54 = vpop.permute.xlu1 %1194  ;;  %v885_v3 = vadd.f32 %v3693_v26, %v874_v40  ;;  %v1377_v0 = vrot.slane %v2795_v62, 2  ;;  %v1166_v49 = vmul.f32 %v2277_v19, %v2834_v8  ;;  %v3699_v26 = vld [vmem:[#allocation59_spill] sm:$0xff] }
 0x117   : >> { %v908_v23 = vadd.f32 %v903_v45, %v882_v31  ;;  %v909_v5 = vadd.f32 %v904_v48, %v883_v52  ;;  %v895_v35 = vpop.permute.xlu0 %894  ;;  %v964_v33 = vadd.f32 %v2412_v57, %v918_v11  ;;  %v1160_v11 = vmul.f32 %v3676_v25, %v1150_v51  ;;  %v3694_v48 = vld [vmem:[#allocation69_spill] sm:$0xff]  ;;  %v3701_v51 = vld [vmem:[#allocation56_spill] sm:$0xff] }
 0x118   : >> { %v896_v46 = vsel %vm495_vm3, %v893_v60, %v895_v35  ;;  %v900_v22 = vsel %vm495_vm3, %v895_v35, %v887_v24  ;;  %v1378_v60 = vrot.slane %v1356_v32, 2  ;;  %v3698_v35 = vld [vmem:[#allocation55_spill] sm:$0xff]  ;;  %v1380_v32 = vrot.slane %v2949_v4, 2 }
 0x119   : >> { %v919_v29 = vadd.f32 %v2822_v17, %v908_v23  ;;  %v920_v31 = vadd.f32 %v2826_v12, %v909_v5  ;;  %v905_v47 = vmul.f32 %v3686_v13, %v896_v46  ;;  %v906_v57 = vmul.f32 %v3686_v13, %v900_v22  ;;  %v3695_v13 = vld [vmem:[#allocation51_spill] sm:$0xff] }
 0x11a   : >> { %v1199_v52 = vpop.permute.xlu1 %1198  ;;  %v3005_v40 = vadd.f32 %v2901_v56, %v964_v33  ;;  %v3014_v23 = vadd.f32 %v535_v9, %v3695_v13  ;;  %v3696_v56 = vld [vmem:[#allocation52_spill] sm:$0xff]  ;;  %v3020_v62 = vadd.f32 %v535_v9, %v3698_v35  ;;  %v1381_v33 = vrot.slane %v1357_v15, 2 }
 0x11b   : >> { %v910_v24 = vadd.f32 %v905_v47, %v884_v7  ;;  %v911_v45 = vadd.f32 %v906_v57, %v885_v3  ;;  %v1197_v17 = vpop.permute.xlu0 %1196  ;;  %v965_v12 = vadd.f32 %v3694_v48, %v919_v29  ;;  %v3017_v5 = vadd.f32 %v534_v55, %v3696_v56  ;;  %v3704_v57 = vld [vmem:[#allocation58_spill] sm:$0xff] }
 0x11c   : >> { %v1185_v19 = vmul.f32 %v3699_v26, %v898_v43  ;;  %v1206_v8 = vsel %vm654_vm5, %v1197_v17, %v1199_v52  ;;  %v3031_v29 = vadd.f32 %v534_v55, %v3701_v51  ;;  %v3039_v15 = vsel %vm786_vm1, %v1377_v0, %v1378_v60 }
 0x11d   : >> { %v921_v25 = vadd.f32 %v2799_v2, %v910_v24  ;;  %v3024_v7 = vadd.f32 %v2849_v50, %v911_v45  ;;  %v3034_v9 = vadd.f32 %v2924_v59, %v965_v12  ;;  %v1171_v2 = vadd.f32 %v1166_v49, %v1160_v11  ;;  %v3702_v50 = vld [vmem:[#allocation53_spill] sm:$0xff]  ;;  %3703 = vst [vmem:[#allocation57_spill] sm:$0xff] %v3039_v15  ;;  %v3705_v11 = vld [vmem:[#allocation62_spill] sm:$0xff] }
 0x11e   : >> { %v1203_v3 = vpop.permute.xlu1 %1202  ;;  %v1179_v47 = vadd.f32 %v3702_v50, %v2903_v44  ;;  %v3042_v43 = vstv %s3697_s2  ;;  %v1178_v24 = vadd.f32 %v3704_v57, %v2920_v41  ;;  %v1184_v55 = vmul.f32 %v3699_v26, %v2940_v42  ;;  %v3708_v41 = vld [vmem:[#allocation54_spill] sm:$0xff]  ;;  %v3709_v42 = vld [vmem:[#allocation60_spill] sm:$0xff]  ;;  %v3712_v57 = vld [vmem:[#allocation65_spill] sm:$0xff] }
 0x11f   : >> { %v1201_v4 = vpop.permute.xlu0 %1200  ;;  %v1186_v45 = vmul.f32 %v3699_v26, %v897_v14  ;;  %v1207_v59 = vsel %vm654_vm5, %v2984_v54, %v1197_v17  ;;  %v1211_v44 = vmul.f32 %v3705_v11, %v1206_v8  ;;  %v3054_v48 = vsel %vm786_vm1, %v1380_v32, %v1381_v33 }
 0x120   : >> { %v3057_v0 = vstv %s3700_s5  ;;  %v3060_v60 = vstv %s2024_s20  ;;  %v1180_v12 = vadd.f32 %v3708_v41, %v2905_v21  ;;  %v1190_v49 = vadd.f32 %v1185_v19, %v1179_v47  ;;  %v3710_v19 = vld [vmem:[#allocation61_spill] sm:$0xff] }
 0x121   : >> { %3706 = vst [vmem:[#allocation45_spill] sm:$0xff] %v3057_v0  ;;  %3707 = vst [vmem:[#allocation46_spill] sm:$0xff] %v3060_v60  ;;  %v1181_v14 = vadd.f32 %v3709_v42, %v2932_v10  ;;  %v1187_v13 = vmul.f32 %v3699_v26, %v896_v46  ;;  %v1188_v17 = vmul.f32 %v3699_v26, %v900_v22  ;;  %v3711_v26 = vld [vmem:[#allocation63_spill] sm:$0xff]  ;;  %v3741_v0 = vld [vmem:[#allocation86_spill] sm:$0xff] }
 0x122   : >> { %v557_v56 = vpop.permute.xlu1 %556  ;;  %v1210_v35 = vmul.f32 %v3705_v11, %v1207_v59  ;;  %v1204_v32 = vsel %vm654_vm5, %v1201_v4, %v1203_v3  ;;  %v1205_v33 = vsel %vm654_vm5, %v1199_v52, %v1201_v4  ;;  %v1189_v51 = vadd.f32 %v1184_v55, %v1178_v24  ;;  %v3713_v55 = vld [vmem:[#allocation70_spill] sm:$0xff] }
 0x123   : >> { %v555_v8 = vpop.permute.xlu0 %554  ;;  %v1191_v21 = vadd.f32 %v1186_v45, %v1180_v12  ;;  %v1182_v50 = vadd.f32 %v3710_v19, %v1171_v2  ;;  %v1216_v46 = vadd.f32 %v1211_v44, %v1190_v49  ;;  %v1208_v22 = vsel %vm654_vm5, %v1203_v3, %v2984_v54 }
 0x124   : >> { %v568_v10 = vsel %vm564_vm4, %v555_v8, %v557_v56  ;;  %v1192_v41 = vadd.f32 %v1187_v13, %v1181_v14  ;;  %v1212_v52 = vmul.f32 %v3705_v11, %v1205_v33  ;;  %v1213_v4 = vmul.f32 %v3705_v11, %v1204_v32  ;;  %v3714_v13 = vld [vmem:[#allocation79_spill] sm:$0xff]  ;;  %v3715_v33 = vld [vmem:[#allocation64_spill] sm:$0xff] }
 0x125   : >> { %v572_v47 = vmul.f32 %v3711_v26, %v568_v10  ;;  %v1222_v59 = vmul.f32 %v3712_v57, %v568_v10  ;;  %v3084_v2 = vadd.f32 %v3713_v55, %v920_v31  ;;  %v1193_v45 = vadd.f32 %v1188_v17, %v1182_v50 }
 0x126   : >> { %v561_v24 = vpop.permute.xlu1 %560  ;;  %v1215_v12 = vadd.f32 %v1210_v35, %v1189_v51  ;;  %v1214_v54 = vmul.f32 %v3705_v11, %v1208_v22  ;;  %v3093_v32 = vadd.f32 %v3714_v13, %v921_v25  ;;  %v1217_v51 = vadd.f32 %v1212_v52, %v1191_v21 }
 0x127   : >> { %v583_v44 = vadd.f32 %v2812_v1, %v572_v47  ;;  %v1227_v49 = vadd.f32 %v1222_v59, %v1216_v46  ;;  %v559_v42 = vpop.permute.xlu0 %558  ;;  %v1218_v19 = vadd.f32 %v1213_v4, %v1192_v41  ;;  %v3716_v41 = vld [vmem:[#allocation80_spill] sm:$0xff] }
 0x128   : >> { %v566_v3 = vsel %vm564_vm4, %v559_v42, %v561_v24  ;;  %v567_v14 = vsel %vm564_vm4, %v557_v56, %v559_v42  ;;  %v3112_v52 = vadd.f32 %v3716_v41, %v3024_v7  ;;  %v1219_v4 = vadd.f32 %v1214_v54, %v1193_v45  ;;  %v3725_v41 = vld [vmem:[#allocation106_spill] sm:$0xff] }
 0x129   : >> { %v629_v31 = vadd.f32 %v3715_v33, %v583_v44  ;;  %v1238_v17 = vadd.f32 %v2830_v6, %v1227_v49  ;;  %v573_v35 = vmul.f32 %v3711_v26, %v567_v14  ;;  %v574_v1 = vmul.f32 %v3711_v26, %v566_v3  ;;  %v3719_v33 = vld [vmem:[#allocation40_spill] sm:$0xff] }
 0x12a   : >> { %v1223_v11 = vmul.f32 %v3712_v57, %v567_v14  ;;  %v1224_v50 = vmul.f32 %v3712_v57, %v566_v3  ;;  %v492_v10 = vpop.permute.xlu1 %491 }
 0x12b   : >> { %v584_v56 = vadd.f32 %v2816_v20, %v573_v35  ;;  %v585_v25 = vadd.f32 %v2788_v38, %v574_v1  ;;  %v497_v46 = vsel %vm495_vm3, %v2700_v53, %v492_v10  ;;  %v563_v6 = vpop.permute.xlu0 %562  ;;  %v3107_v22 = vadd.f32 %v2894_v34, %v629_v31  ;;  %v3717_v20 = vld [vmem:[#allocation66_spill] sm:$0xff]  ;;  %v3718_v38 = vld [vmem:[#allocation67_spill] sm:$0xff] }
 0x12c   : >> { %v1228_v47 = vadd.f32 %v1223_v11, %v1217_v51  ;;  %v1229_v21 = vadd.f32 %v1224_v50, %v1218_v19  ;;  %v504_v59 = vmul.f32 %v2238_v36, %v497_v46  ;;  %v3121_v53 = vmul.f32 %v2247_v39, %v497_v46  ;;  %v3720_v35 = vld [vmem:[#allocation107_spill] sm:$0xff] }
 0x12d   : >> { %v3115_v55 = vadd.f32 %v3717_v20, %v584_v56  ;;  %v3118_v44 = vadd.f32 %v3718_v38, %v585_v25  ;;  %v565_v7 = vsel %vm564_vm4, %v561_v24, %v563_v6  ;;  %v3133_v54 = vmul.f32 %v3678_v37, %v497_v46  ;;  %v3721_v19 = vld [vmem:[#allocation99_spill] sm:$0xff]  ;;  %v3722_v56 = vld [vmem:[#allocation108_spill] sm:$0xff] }
 0x12e   : >> { %v3124_v34 = vadd.f32 %v2841_v27, %v1228_v47  ;;  %v3127_v49 = vadd.f32 %v2803_v18, %v1229_v21  ;;  %v509_v42 = vadd.f32 %v504_v59, %v2837_v16  ;;  %v645_v45 = vpop.permute.xlu1 %644  ;;  %v569_v3 = vsel %vm564_vm4, %v563_v6, %v555_v8  ;;  %v3726_v20 = vld [vmem:[#allocation68_spill] sm:$0xff] }
 0x12f   : >> { %v575_v14 = vmul.f32 %v3711_v26, %v565_v7  ;;  %v1225_v27 = vmul.f32 %v3712_v57, %v565_v7  ;;  %v494_v13 = vpop.permute.xlu0 %493  ;;  %v571_v31 = vmul.f32 %v3711_v26, %v569_v3  ;;  %v1221_v16 = vmul.f32 %v3712_v57, %v569_v3  ;;  %v3723_v57 = vld [vmem:[#allocation72_spill] sm:$0xff]  ;;  %v3727_v7 = vld [vmem:[#allocation41_spill] sm:$0xff] }
 0x130   : >> { %v515_v18 = vadd.f32 %v3719_v33, %v509_v42  ;;  %v496_v24 = vsel %vm495_vm3, %v492_v10, %v494_v13  ;;  %v500_v8 = vsel %vm495_vm3, %v494_v13, %v3721_v19  ;;  %v3724_v10 = vld [vmem:[#allocation111_spill] sm:$0xff]  ;;  %v1284_v38 = vadd.f32 %v3726_v20, %v1238_v17  ;;  %v3729_v13 = vld [vmem:[#allocation109_spill] sm:$0xff] }
 0x131   : >> { %v586_v1 = vadd.f32 %v3720_v35, %v575_v14  ;;  %v1230_v51 = vadd.f32 %v1225_v27, %v1219_v4  ;;  %v505_v11 = vmul.f32 %v2238_v36, %v496_v24  ;;  %v582_v25 = vadd.f32 %v3722_v56, %v571_v31  ;;  %v3728_v14 = vld [vmem:[#allocation71_spill] sm:$0xff] }
 0x132   : >> { %v520_v50 = vmax.f32 %v515_v18, 0.0  ;;  %v1226_v6 = vadd.f32 %v1221_v16, %v1215_v12  ;;  %v506_v26 = vmul.f32 %v2238_v36, %v500_v8  ;;  %v3151_v47 = vpop.permute.xlu1 %648  ;;  %v3730_v12 = vld [vmem:[#allocation110_spill] sm:$0xff]  ;;  %v3731_v36 = vld [vmem:[#allocation43_spill] sm:$0xff] }
 0x133   : >> { %v632_v21 = vadd.f32 %v3723_v57, %v586_v1  ;;  %v1241_v59 = vadd.f32 %v3724_v10, %v1230_v51  ;;  %v510_v4 = vadd.f32 %v505_v11, %v3725_v41  ;;  %v647_v42 = vpop.permute.xlu0 %646  ;;  %v628_v27 = vadd.f32 %v3728_v14, %v582_v25  ;;  %v3734_v10 = vld [vmem:[#allocation42_spill] sm:$0xff] }
 0x134   : >> { %v526_v3 = vmul.f32 %v3727_v7, %v520_v50  ;;  %v1237_v18 = vadd.f32 %v3729_v13, %v1226_v6  ;;  %v511_v31 = vadd.f32 %v506_v26, %v3730_v12  ;;  %v3162_v16 = vmul.f32 %v3731_v36, %v497_v46  ;;  %v3732_v46 = vld [vmem:[#allocation112_spill] sm:$0xff]  ;;  %v3733_v26 = vld [vmem:[#allocation73_spill] sm:$0xff]  ;;  %v3735_v14 = vld [vmem:[#allocation50_spill] sm:$0xff] }
 0x135   : >> { %v516_v35 = vadd.f32 %v3719_v33, %v510_v4  ;;  %v3166_v1 = vmul.f32 %v2247_v39, %v496_v24  ;;  %v638_v51 = vmul.f32 %v2247_v39, %v500_v8  ;;  %v3171_v11 = vmul.f32 %v3678_v37, %v496_v24  ;;  %v3736_v12 = vld [vmem:[#allocation74_spill] sm:$0xff] }
 0x136   : >> { %v536_v17 = vrot.slane %v526_v3, 7  ;;  %v517_v19 = vadd.f32 %v3719_v33, %v511_v31  ;;  %v3174_v50 = vmul.f32 %v3678_v37, %v500_v8  ;;  %v653_v56 = vpop.permute.xlu1 %652  ;;  %v639_v6 = vadd.f32 %v3732_v46, %v628_v27  ;;  %v3737_v31 = vld [vmem:[#allocation77_spill] sm:$0xff] }
 0x137   : >> { %v521_v25 = vmax.f32 %v516_v35, 0.0  ;;  %v1283_v57 = vadd.f32 %v3733_v26, %v1237_v18  ;;  %v1295_v41 = vadd.f32 %v3734_v10, %v1284_v38  ;;  %v651_v4 = vpop.permute.xlu0 %650  ;;  %v657_v39 = vsel %vm654_vm5, %v647_v42, %v3151_v47 }
 0x138   : >> { %v522_v20 = vmax.f32 %v517_v19, 0.0  ;;  %v658_v33 = vsel %vm654_vm5, %v645_v45, %v647_v42  ;;  %v643_v3 = vadd.f32 %v638_v51, %v632_v21  ;;  %v662_v18 = vmul.f32 %v3736_v12, %v657_v39 }
 0x139   : >> { %v527_v37 = vmul.f32 %v3727_v7, %v521_v25  ;;  %v1294_v13 = vadd.f32 %v3735_v14, %v1283_v57  ;;  %v661_v27 = vmul.f32 %v3736_v12, %v658_v33  ;;  %v1300_v35 = vmul.f32 %v3737_v31, %v658_v33  ;;  %v3738_v33 = vld [vmem:[#allocation78_spill] sm:$0xff]  ;;  %v3739_v14 = vld [vmem:[#allocation75_spill] sm:$0xff] }
 0x13a   : >> { %v528_v38 = vmul.f32 %v3727_v7, %v522_v20  ;;  %v1301_v19 = vmul.f32 %v3737_v31, %v657_v39  ;;  %v659_v46 = vsel %vm654_vm5, %v653_v56, %v645_v45  ;;  %v1313_v26 = vpop.permute.xlu1 %1312  ;;  %v3194_v21 = vmul.f32 %v3731_v36, %v496_v24 }
 0x13b   : >> { %v666_v42 = vadd.f32 %v661_v27, %v639_v6  ;;  %v667_v51 = vadd.f32 %v662_v18, %v3107_v22  ;;  %v665_v25 = vmul.f32 %v3736_v12, %v659_v46  ;;  %v3198_v57 = vpop.permute.xlu0 %1310  ;;  %v537_v10 = vrot.slane %v527_v37, 7  ;;  %v3740_v27 = vld [vmem:[#allocation85_spill] sm:$0xff] }
 0x13c   : >> { %v538_v7 = vrot.slane %v528_v38, 7  ;;  %v1293_v20 = vmul.f32 %v3731_v36, %v500_v8  ;;  %v1287_v39 = vadd.f32 %v3738_v33, %v1241_v59  ;;  %v1304_v24 = vmul.f32 %v3737_v31, %v659_v46  ;;  %v3743_v46 = vld [vmem:[#allocation87_spill] sm:$0xff] }
 0x13d   : >> { %v672_v61 = vadd.f32 %v3739_v14, %v666_v42  ;;  %v673_v45 = vadd.f32 %v3739_v14, %v667_v51  ;;  %v670_v63 = vadd.f32 %v665_v25, %v643_v3  ;;  %v3205_v6 = vadd.f32 %v1300_v35, %v1294_v13  ;;  %v3742_v51 = vld [vmem:[#allocation81_spill] sm:$0xff]  ;;  %v3744_v35 = vld [vmem:[#allocation76_spill] sm:$0xff] }
 0x13e   : >> { %v1306_v22 = vadd.f32 %v1301_v19, %v1295_v41  ;;  %v548_v18 = vadd.f32 %v538_v7, %v3740_v27  ;;  %v1298_v60 = vadd.f32 %v1293_v20, %v1287_v39  ;;  %v1317_v15 = vpop.permute.xlu1 %1316  ;;  %v553_v8 = vadd.f32 %v538_v7, %v3741_v0  ;;  %v3745_v0 = vld [vmem:[#allocation82_spill] sm:$0xff]  ;;  %v3747_v20 = vld [vmem:[#allocation83_spill] sm:$0xff] }
 0x13f   : >> { %v677_v37 = vmax.f32 %v672_v61, 0.0  ;;  %v678_v38 = vmax.f32 %v673_v45, 0.0  ;;  %v676_v59 = vadd.f32 %v3739_v14, %v670_v63  ;;  %v1315_v36 = vpop.permute.xlu0 %1314  ;;  %v3213_v3 = vadd.f32 %v536_v17, %v3742_v51  ;;  %v3746_v63 = vld [vmem:[#allocation88_spill] sm:$0xff] }
 0x140   : >> { %v3210_v42 = vadd.f32 %v1304_v24, %v1298_v60  ;;  %v3216_v13 = vadd.f32 %v537_v10, %v3743_v46  ;;  %v641_v41 = vadd.f32 %v3121_v53, %v3115_v55  ;;  %v3223_v7 = vadd.f32 %v536_v17, %v3745_v0 }
 0x141   : >> { %v683_v19 = vmul.f32 %v3744_v35, %v677_v37  ;;  %v684_v61 = vmul.f32 %v3744_v35, %v678_v38  ;;  %v681_v25 = vmax.f32 %v676_v59, 0.0  ;;  %v3226_v60 = vadd.f32 %v537_v10, %v3746_v63  ;;  %v3749_v63 = vld [vmem:[#allocation89_spill] sm:$0xff] }
 0x142   : >> { %v1285_v33 = vadd.f32 %v3747_v20, %v3124_v34  ;;  %v655_v39 = vsel %vm654_vm5, %v651_v4, %v653_v56  ;;  %v656_v55 = vsel %vm654_vm5, %v3151_v47, %v651_v4  ;;  %v1001_v53 = vpop.permute.xlu1 %1000  ;;  %v642_v10 = vadd.f32 %v3166_v1, %v3118_v44  ;;  %v3748_v34 = vld [vmem:[#allocation84_spill] sm:$0xff] }
 0x143   : >> { %v693_v45 = vrot.slane %v683_v19, 7  ;;  %v694_v24 = vrot.slane %v684_v61, 7  ;;  %v687_v27 = vmul.f32 %v3744_v35, %v681_v25  ;;  %v663_v17 = vmul.f32 %v3736_v12, %v656_v55  ;;  %v1319_v37 = vpop.permute.xlu0 %1318 }
 0x144   : >> { %v1286_v38 = vadd.f32 %v3748_v34, %v3127_v49  ;;  %v1296_v56 = vadd.f32 %v3162_v16, %v1285_v33  ;;  %v664_v59 = vmul.f32 %v3736_v12, %v655_v39  ;;  %v1302_v49 = vmul.f32 %v3737_v31, %v656_v55 }
 0x145   : >> { %v3244_v47 = vadd.f32 %v693_v45, %v3031_v29  ;;  %v3247_v4 = vadd.f32 %v694_v24, %v3014_v23  ;;  %v3250_v51 = vadd.f32 %v693_v45, %v3017_v5  ;;  %v3253_v46 = vadd.f32 %v694_v24, %v3020_v62 }
 0x146   : >> { %v697_v44 = vrot.slane %v687_v27, 7  ;;  %v668_v1 = vadd.f32 %v663_v17, %v641_v41  ;;  %v669_v19 = vadd.f32 %v664_v59, %v642_v10  ;;  %v1005_v16 = vpop.permute.xlu1 %1004  ;;  %v1303_v12 = vmul.f32 %v3737_v31, %v655_v39 }
 0x147   : >> { %v1323_v29 = vsel %vm564_vm4, %v3198_v57, %v1313_v26  ;;  %v1321_v23 = vsel %vm564_vm4, %v1315_v36, %v1317_v15  ;;  %v1322_v5 = vsel %vm564_vm4, %v1313_v26, %v1315_v36  ;;  %v1003_v62 = vpop.permute.xlu0 %1002  ;;  %v1297_v31 = vadd.f32 %v3194_v21, %v1286_v38 }
 0x148   : >> { %v3264_v61 = vadd.f32 %v697_v44, %v548_v18  ;;  %v3266_v41 = vadd.f32 %v697_v44, %v553_v8  ;;  %v674_v25 = vadd.f32 %v3739_v14, %v668_v1  ;;  %v675_v0 = vadd.f32 %v3739_v14, %v669_v19  ;;  %v3750_v1 = vld [vmem:[#allocation90_spill] sm:$0xff] }
 0x149   : >> { %v1327_v20 = vmul.f32 %v3749_v63, %v1323_v29  ;;  %v1328_v33 = vmul.f32 %v3749_v63, %v1322_v5  ;;  %v1329_v39 = vmul.f32 %v3749_v63, %v1321_v23  ;;  %v1320_v26 = vsel %vm564_vm4, %v1317_v15, %v1319_v37 }
 0x14a   : >> { %v679_v55 = vmax.f32 %v674_v25, 0.0  ;;  %v680_v45 = vmax.f32 %v675_v0, 0.0  ;;  %v1324_v18 = vsel %vm564_vm4, %v1319_v37, %v3198_v57  ;;  %v1009_v8 = vpop.permute.xlu1 %1008  ;;  %v1307_v36 = vadd.f32 %v1302_v49, %v1296_v56 }
 0x14b   : >> { %v1308_v14 = vadd.f32 %v1303_v12, %v1297_v31  ;;  %v1332_v24 = vadd.f32 %v1327_v20, %v1306_v22  ;;  %v1326_v21 = vmul.f32 %v3749_v63, %v1324_v18  ;;  %v1007_v27 = vpop.permute.xlu0 %1006  ;;  %v1330_v34 = vmul.f32 %v3749_v63, %v1320_v26  ;;  %v3751_v12 = vld [vmem:[#allocation91_spill] sm:$0xff] }
 0x14c   : >> { %v685_v17 = vmul.f32 %v3744_v35, %v679_v55  ;;  %v686_v10 = vmul.f32 %v3744_v35, %v680_v45  ;;  %v977_v15 = vadd.f32 %v3133_v54, %v3084_v2  ;;  %v1333_v38 = vadd.f32 %v1328_v33, %v1307_v36 }
 0x14d   : >> { %v1012_v57 = vsel %vm427_vm2, %v1003_v62, %v1005_v16  ;;  %v1013_v37 = vsel %vm427_vm2, %v1001_v53, %v1003_v62  ;;  %v1014_v22 = vsel %vm427_vm2, %v1009_v8, %v1001_v53  ;;  %v1334_v44 = vadd.f32 %v1329_v39, %v1308_v14 }
 0x14e   : >> { %v695_v56 = vrot.slane %v685_v17, 7  ;;  %v696_v59 = vrot.slane %v686_v10, 7  ;;  %v1017_v35 = vmul.f32 %v3750_v1, %v1013_v37  ;;  %v1075_v19 = vpop.permute.xlu1 %1074  ;;  %v1018_v49 = vmul.f32 %v3750_v1, %v1012_v57  ;;  %v3757_v10 = vld [vmem:[#allocation101_spill] sm:$0xff] }
 0x14f   : >> { %v1338_v2 = vmul.f32 %v3751_v12, %v1013_v37  ;;  %v1339_v54 = vmul.f32 %v3751_v12, %v1012_v57  ;;  %v1016_v29 = vmul.f32 %v3750_v1, %v1014_v22  ;;  %v3296_v23 = vpop.permute.xlu0 %1072  ;;  %v1331_v62 = vadd.f32 %v1326_v21, %v3205_v6  ;;  %v3759_v37 = vld [vmem:[#allocation93_spill] sm:$0xff] }
 0x150   : >> { %v705_v5 = vadd.f32 %v695_v56, %v3213_v3  ;;  %v710_v53 = vadd.f32 %v695_v56, %v3223_v7  ;;  %v1335_v25 = vadd.f32 %v1330_v34, %v3210_v42  ;;  %v706_v0 = vadd.f32 %v696_v59, %v3216_v13  ;;  %v3760_v56 = vld [vmem:[#allocation98_spill] sm:$0xff] }
 0x151   : >> { %v711_v31 = vadd.f32 %v696_v59, %v3226_v60  ;;  %v1022_v63 = vadd.f32 %v1017_v35, %v3034_v9  ;;  %v1023_v20 = vadd.f32 %v1018_v49, %v977_v15  ;;  %v1343_v33 = vadd.f32 %v1338_v2, %v1332_v24  ;;  %v3755_v24 = vld [vmem:[#allocation97_spill] sm:$0xff]  ;;  %v3761_v35 = vld [vmem:[#allocation102_spill] sm:$0xff] }
 0x152   : >> { %v1021_v39 = vadd.f32 %v1016_v29, %v3005_v40  ;;  %v1337_v55 = vmul.f32 %v3751_v12, %v1014_v22  ;;  %v979_v3 = vadd.f32 %v3174_v50, %v3112_v52  ;;  %v1079_v7 = vpop.permute.xlu1 %1078  ;;  %v1344_v45 = vadd.f32 %v1339_v54, %v1333_v38  ;;  %v3752_v50 = vld [vmem:[#allocation92_spill] sm:$0xff] }
 0x153   : >> { %v978_v6 = vadd.f32 %v3171_v11, %v3093_v32  ;;  %v1010_v42 = vsel %vm427_vm2, %v1007_v27, %v1009_v8  ;;  %v1011_v9 = vsel %vm427_vm2, %v1005_v16, %v1007_v27  ;;  %v1077_v13 = vpop.permute.xlu0 %1076  ;;  %v3753_v36 = vrot.slane %v3752_v50, 7  ;;  %v3754_v11 = vld [vmem:[#allocation96_spill] sm:$0xff] }
 0x154   : >> { %v1342_v60 = vadd.f32 %v1337_v55, %v1331_v62  ;;  %v1019_v40 = vmul.f32 %v3750_v1, %v1011_v9  ;;  %v1020_v26 = vmul.f32 %v3750_v1, %v1010_v42  ;;  %v1340_v18 = vmul.f32 %v3751_v12, %v1011_v9  ;;  %v3765_v62 = vld [vmem:[#allocation100_spill] sm:$0xff]  ;;  %v3766_v55 = vld [vmem:[#allocation103_spill] sm:$0xff] }
 0x155   : >> { %v1341_v52 = vmul.f32 %v3751_v12, %v1010_v42  ;;  %v849_v32 = vadd.f32 %v3753_v36, %v3250_v51  ;;  %v1067_v14 = vadd.f32 %v3754_v11, %v1021_v39  ;;  %v1085_v16 = vsel %vm495_vm3, %v3296_v23, %v1075_v19 }
 0x156   : >> { %v1024_v8 = vadd.f32 %v1019_v40, %v978_v6  ;;  %v1388_v21 = vadd.f32 %v3755_v24, %v1342_v60  ;;  %v3756_v27 = vmov %v3753_v36  ;;  %v3758_v34 = vrot.slane %v3757_v10, 7  ;;  %v3335_v38 = vpop.permute.xlu1 %1404  ;;  %v3767_v6 = vld [vmem:[#allocation104_spill] sm:$0xff]  ;;  %v3769_v40 = vld [vmem:[#allocation94_spill] sm:$0xff] }
 0x157   : >> { %v844_v17 = vadd.f32 %v3756_v27, %v3244_v47  ;;  %v1025_v51 = vadd.f32 %v1020_v26, %v979_v3  ;;  %v3337_v57 = vadd.f32 %v1340_v18, %v1334_v44  ;;  %v1088_v22 = vmul.f32 %v3759_v37, %v1085_v16  ;;  %v3774_v10 = vld [vmem:[#allocation44_spill] sm:$0xff] }
 0x158   : >> { %v3333_v15 = vadd.f32 %v3758_v34, %v3247_v4  ;;  %v1394_v59 = vmul.f32 %v3760_v56, %v1085_v16  ;;  %v1346_v1 = vadd.f32 %v1341_v52, %v1335_v25  ;;  %v3762_v49 = vrot.slane %v3761_v35, 7  ;;  %v1081_v25 = vpop.permute.xlu0 %1080 }
 0x159   : >> { %v3763_v47 = vmov %v3758_v34  ;;  %v1093_v44 = vadd.f32 %v1088_v22, %v1067_v14  ;;  %v1068_v39 = vadd.f32 %v3765_v62, %v1022_v63  ;;  %v1069_v3 = vadd.f32 %v3766_v55, %v1023_v20 }
 0x15a   : >> { %v3343_v12 = vadd.f32 %v3762_v49, %v705_v5  ;;  %v3348_v2 = vadd.f32 %v3763_v47, %v3253_v46  ;;  %v3764_v4 = vmov %v3762_v49  ;;  %v1399_v29 = vadd.f32 %v1394_v59, %v1388_v21  ;;  %v3768_v5 = vld [vmem:[#allocation105_spill] sm:$0xff]  ;;  %v1409_v36 = vpop.permute.xlu1 %1408  ;;  %v3776_v59 = vld [vmem:[#allocation95_spill] sm:$0xff] }
 0x15b   : >> { %v3352_v54 = vadd.f32 %v3764_v4, %v710_v53  ;;  %v1389_v42 = vadd.f32 %v3767_v6, %v1343_v33  ;;  %v1390_v9 = vadd.f32 %v3768_v5, %v1344_v45  ;;  %v1083_v60 = vsel %vm495_vm3, %v1077_v13, %v1079_v7 }
 0x15c   : >> { %v1084_v46 = vsel %vm495_vm3, %v1075_v19, %v1077_v13  ;;  %v1099_v53 = vadd.f32 %v3769_v40, %v1093_v44  ;;  %v1090_v18 = vmul.f32 %v3759_v37, %v1083_v60  ;;  %v1396_v20 = vmul.f32 %v3760_v56, %v1083_v60  ;;  %v1407_v47 = vpop.permute.xlu0 %1406 }
 0x15d   : >> { %v1089_v26 = vmul.f32 %v3759_v37, %v1084_v46  ;;  %v1395_v63 = vmul.f32 %v3760_v56, %v1084_v46  ;;  %v3770_v33 = vrot.slane %v2959_v30, 7  ;;  %v3771_v45 = vrot.slane %v2987_v58, 7 }
 0x15e   : >> { %v1104_v11 = vmax.f32 %v1099_v53, 0.0  ;;  %v1095_v16 = vadd.f32 %v1090_v18, %v1069_v3  ;;  %v3385_v27 = vadd.f32 %v1396_v20, %v1390_v9  ;;  %v1070_v34 = vadd.f32 %v3774_v10, %v1024_v8 }
 0x15f   : >> { %v3369_v52 = vadd.f32 %v3770_v33, %v706_v0  ;;  %v3374_v50 = vadd.f32 %v3771_v45, %v3264_v61  ;;  %v3772_v19 = vmov %v3770_v33  ;;  %v1094_v14 = vadd.f32 %v1089_v26, %v1068_v39  ;;  %v3775_v61 = vld [vmem:[#allocation48_spill] sm:$0xff] }
 0x160   : >> { %v3378_v13 = vadd.f32 %v3772_v19, %v711_v31  ;;  %v3773_v24 = vmov %v3771_v45  ;;  %v1400_v0 = vadd.f32 %v1395_v63, %v1389_v42  ;;  %v1071_v22 = vadd.f32 %v3775_v61, %v1025_v51  ;;  %v1411_v20 = vpop.permute.xlu0 %1410 }
 0x161   : >> { %v3383_v21 = vadd.f32 %v3773_v24, %v3266_v41  ;;  %v1110_v30 = vmul.f32 %v3776_v59, %v1104_v11  ;;  %v1100_v31 = vadd.f32 %v3769_v40, %v1094_v14  ;;  %v1101_v35 = vadd.f32 %v3769_v40, %v1095_v16 }
 0x162   : >> { %v1082_v49 = vsel %vm495_vm3, %v1079_v7, %v1081_v25  ;;  %v1392_v58 = vadd.f32 %v3054_v48, %v1346_v1  ;;  %v1086_v41 = vsel %vm495_vm3, %v1081_v25, %v3296_v23  ;;  %v1416_v7 = vsel %vm654_vm5, %v1407_v47, %v1409_v36  ;;  %v1413_v23 = vpop.permute.xlu1 %1412 }
 0x163   : >> { %v1091_v8 = vmul.f32 %v3759_v37, %v1082_v49  ;;  %v1397_v51 = vmul.f32 %v3760_v56, %v1082_v49  ;;  %v1120_v4 = vrot.slane %v1110_v30, 7  ;;  %v1105_v44 = vmax.f32 %v1100_v31, 0.0 }
 0x164   : >> { %v1106_v62 = vmax.f32 %v1101_v35, 0.0  ;;  %v1092_v39 = vmul.f32 %v3759_v37, %v1086_v41  ;;  %v1398_v3 = vmul.f32 %v3760_v56, %v1086_v41  ;;  %v1417_v48 = vsel %vm654_vm5, %v3335_v38, %v1407_v47 }
 0x165   : >> { %v1096_v55 = vadd.f32 %v1091_v8, %v1070_v34  ;;  %v1130_v1 = vadd.f32 %v1120_v4, %v844_v17  ;;  %v1135_v25 = vadd.f32 %v1120_v4, %v849_v32  ;;  %v1111_v6 = vmul.f32 %v3776_v59, %v1105_v44 }
 0x166   : >> { %v1112_v42 = vmul.f32 %v3776_v59, %v1106_v62  ;;  %v1097_v5 = vadd.f32 %v1092_v39, %v1071_v22  ;;  %v1403_v9 = vadd.f32 %v1398_v3, %v1392_v58  ;;  %v1420_v56 = vmul.f32 %v3042_v43, %v1417_v48 }
 0x167   : >> { %v1102_v37 = vadd.f32 %v3769_v40, %v1096_v55  ;;  %v1121_v60 = vrot.slane %v1111_v6, 7  ;;  %v1421_v53 = vmul.f32 %v3042_v43, %v1416_v7  ;;  %v1418_v26 = vsel %vm654_vm5, %v1413_v23, %v3335_v38 }
 0x168   : >> { %v1122_v46 = vrot.slane %v1112_v42, 7  ;;  %v1103_v32 = vadd.f32 %v3769_v40, %v1097_v5  ;;  %v1425_v18 = vadd.f32 %v1420_v56, %v1399_v29  ;;  %v1424_v63 = vmul.f32 %v3042_v43, %v1418_v26  ;;  %v3777_v40 = vld [vmem:[#allocation45_spill] sm:$0xff] }
 0x169   : >> { %v1107_v17 = vmax.f32 %v1102_v37, 0.0  ;;  %v1131_v33 = vadd.f32 %v1121_v60, %v3333_v15  ;;  %v1136_v19 = vadd.f32 %v1121_v60, %v3348_v2  ;;  %v1426_v16 = vadd.f32 %v1421_v53, %v1400_v0  ;;  %v3778_v29 = vld [vmem:[#allocation57_spill] sm:$0xff] }
 0x16a   : >> { %v3419_v45 = vadd.f32 %v1122_v46, %v3343_v12  ;;  %v3423_v11 = vadd.f32 %v1122_v46, %v3352_v54  ;;  %v1108_v14 = vmax.f32 %v1103_v32, 0.0  ;;  %v1431_v24 = vadd.f32 %v3777_v40, %v1425_v18 }
 0x16b   : >> { %v1113_v38 = vmul.f32 %v3776_v59, %v1107_v17  ;;  %v1391_v10 = vadd.f32 %v3778_v29, %v3337_v57  ;;  %v1429_v34 = vadd.f32 %v1424_v63, %v1403_v9  ;;  %v1414_v15 = vsel %vm654_vm5, %v1411_v20, %v1413_v23 }
 0x16c   : >> { %v1415_v12 = vsel %vm654_vm5, %v1409_v36, %v1411_v20  ;;  %v1114_v2 = vmul.f32 %v3776_v59, %v1108_v14  ;;  %v1432_v61 = vadd.f32 %v3777_v40, %v1426_v16  ;;  %v1436_v22 = vmax.f32 %v1431_v24, 0.0  ;;  %v3780_v59 = vld [vmem:[#allocation46_spill] sm:$0xff] }
 0x16d   : >> { %v1123_v54 = vrot.slane %v1113_v38, 7  ;;  %v1402_v30 = vadd.f32 %v1397_v51, %v1391_v10  ;;  %v1435_v0 = vadd.f32 %v3777_v40, %v1429_v34  ;;  %v1422_v31 = vmul.f32 %v3042_v43, %v1415_v12 }
 0x16e   : >> { %v1423_v57 = vmul.f32 %v3042_v43, %v1414_v15  ;;  %v1124_v35 = vrot.slane %v1114_v2, 7  ;;  %v1437_v36 = vmax.f32 %v1432_v61, 0.0  ;;  %v1442_v47 = vmul.f32 %v3780_v59, %v1436_v22 }
 0x16f   : >> { %v1133_v49 = vadd.f32 %v1123_v54, %v3369_v52  ;;  %v1138_v28 = vadd.f32 %v1123_v54, %v3378_v13  ;;  %v1440_v58 = vmax.f32 %v1435_v0, 0.0  ;;  %v1427_v41 = vadd.f32 %v1422_v31, %v3385_v27 }
 0x170   : >> { %v1428_v8 = vadd.f32 %v1423_v57, %v1402_v30  ;;  %v1134_v51 = vadd.f32 %v1124_v35, %v3374_v50  ;;  %v1139_v4 = vadd.f32 %v1124_v35, %v3383_v21  ;;  %v1443_v43 = vmul.f32 %v3780_v59, %v1437_v36 }
 0x171   : >> { %v1452_v44 = vrot.slane %v1442_v47, 7  ;;  %v1446_v62 = vmul.f32 %v3780_v59, %v1440_v58  ;;  %v1433_v52 = vadd.f32 %v3777_v40, %v1427_v41  ;;  %v1472_v39 = vstv %s2026_s1 }
 0x172   : >> { %v1434_v13 = vadd.f32 %v3777_v40, %v1428_v8  ;;  %v1453_v55 = vrot.slane %v1443_v43, 7 }
 0x173   : >> { %v1462_v3 = vadd.f32 %v1452_v44, %v1130_v1  ;;  %v1467_v27 = vadd.f32 %v1452_v44, %v1135_v25  ;;  %v1456_v7 = vrot.slane %v1446_v62, 7  ;;  %v1438_v48 = vmax.f32 %v1433_v52, 0.0 }
 0x174   : >> { %v1463_v50 = vadd.f32 %v1453_v55, %v1131_v33  ;;  %v1468_v23 = vadd.f32 %v1453_v55, %v1136_v19  ;;  %v1439_v21 = vmax.f32 %v1434_v13, 0.0 }
 0x175   : >> { %v1473_v6 = vadd.f32 %v1472_v39, %v1462_v3  ;;  %v1478_v42 = vadd.f32 %v1472_v39, %v1467_v27  ;;  %v1466_v5 = vadd.f32 %v1456_v7, %v1134_v51  ;;  %v1471_v37 = vadd.f32 %v1456_v7, %v1139_v4 }
 0x176   : >> { %v1474_v9 = vadd.f32 %v1472_v39, %v1463_v50  ;;  %v1479_v56 = vadd.f32 %v1472_v39, %v1468_v23  ;;  %v1444_v60 = vmul.f32 %v3780_v59, %v1438_v48  ;;  %v1445_v46 = vmul.f32 %v3780_v59, %v1439_v21 }
 0x177   : >> { %v1493_v1 = vrot.slane %v1473_v6, 1  ;;  %v1494_v25 = vrot.slane %v1478_v42, 1  ;;  %v1477_v53 = vadd.f32 %v1472_v39, %v1466_v5  ;;  %v1482_v26 = vadd.f32 %v1472_v39, %v1471_v37 }
 0x178   : >> { %v1496_v32 = vrot.slane %v1474_v9, 1  ;;  %v1497_v17 = vrot.slane %v1479_v56, 1  ;;  %v1454_v18 = vrot.slane %v1444_v60, 7  ;;  %v1455_v63 = vrot.slane %v1445_v46, 7 }
 0x179   : >> { %v1495_v20 = vsel %vm394_vm0, %v1493_v1, %v1494_v25  ;;  %v1505_v33 = vrot.slane %v1477_v53, 1  ;;  %v1506_v19 = vrot.slane %v1482_v26, 1 }
 0x17a   : >> { %v1498_v14 = vsel %vm394_vm0, %v1496_v32, %v1497_v17  ;;  %1516 = vst [vmem:[%s3453_s4] sm:$0xff] %v1495_v20  ;;  %v1464_v38 = vadd.f32 %v1454_v18, %v3419_v45  ;;  %v1465_v16 = vadd.f32 %v1455_v63, %v1133_v49  ;;  %v1469_v40 = vadd.f32 %v1454_v18, %v3423_v11 }
 0x17b   : >> { %1517 = vst [vmem:[%s3453_s4 + $0x8] sm:$0xff] %v1498_v14  ;;  %v1507_v24 = vsel %vm394_vm0, %v1505_v33, %v1506_v19  ;;  %v1470_v29 = vadd.f32 %v1455_v63, %v1138_v28 }
 0x17c   : >> { %1520 = vst [vmem:[%s3453_s4 + $0x20] sm:$0xff] %v1507_v24  ;;  %v1475_v10 = vadd.f32 %v1472_v39, %v1464_v38  ;;  %v1476_v34 = vadd.f32 %v1472_v39, %v1465_v16  ;;  %v1480_v15 = vadd.f32 %v1472_v39, %v1469_v40  ;;  %326 = sbr.rel (!%p324_p7) target bundleno = 108 (0x6c), region = 92 }
 0x17d   : >> { %v1481_v12 = vadd.f32 %v1472_v39, %v1470_v29 }
 0x17e   : >> { %v1499_v2 = vrot.slane %v1475_v10, 1  ;;  %v1500_v54 = vrot.slane %v1480_v15, 1  ;;  %v1502_v61 = vrot.slane %v1476_v34, 1 }
 0x17f   : >> { %v1503_v22 = vrot.slane %v1481_v12, 1 }
 0x180   : >> { %v1501_v45 = vsel %vm394_vm0, %v1499_v2, %v1500_v54 }
 0x181   : >> { %v1504_v30 = vsel %vm394_vm0, %v1502_v61, %v1503_v22  ;;  %1518 = vst [vmem:[%s3453_s4 + $0x10] sm:$0xff] %v1501_v45 }
 0x182   : >> { %1519 = vst [vmem:[%s3453_s4 + $0x18] sm:$0xff] %v1504_v30 }
 0x183 PF: > { %s3782_s24 = sld [smem:[#allocation10_spill]] }
 0x189   : > { %s18_s20 = sadd.s32 1, %s3782_s24  }
 0x18a   : > { %p15_p4 = scmp.ge.s32.totalorder %s18_s20, 4  }
 0x18c   :  { %17 = sbr.rel (!%p15_p4) target bundleno = 9 (0x9), region = 103 }
 0x193   :  { %1545 = vsyncpa [#allocation4], 1 }
 0x194   :  { %1547 = vsyncpa [#allocation4 + $0x1], 1 }
 0x195   :  { %1548 = vsyncpa [#allocation6], 1 }

</bundles_post_ra>
